<compile_context>
chip_gen: v6e
topology: v6e:2x2x1
jax: 0.10.0
libtpu: 0.0.40
codegen_flags: <defaults>
</compile_context>

<pallas_src>
import functools

import jax
import jax.numpy as jnp
import numpy as np
from jax.experimental import pallas as pl
from jax.experimental.pallas import tpu as pltpu


def _round_up(v, m):
    return ((v + m - 1) // m) * m


def _embed_blocks(mat, n_rb, n_cb, r_in, c_in, r_out, c_out):
    """Place each (r_in, c_in) block of `mat` at stride (r_out, c_out) in a zero matrix."""
    m = np.asarray(mat, dtype=np.float32)
    out = np.zeros((n_rb * r_out, n_cb * c_out), np.float32)
    for i in range(n_rb):
        for j in range(n_cb):
            out[i * r_out:i * r_out + r_in, j * c_out:j * c_out + c_in] = \
                m[i * r_in:(i + 1) * r_in, j * c_in:(j + 1) * c_in]
    return jnp.asarray(out)


# ----------------------------------------------------------------------------
# Fused Pallas kernel: one grid step == one topological level of the tree
# ----------------------------------------------------------------------------

def _tree_lstm_fused_kernel(n_pad, m_pad, h_pad,
                            # scalar-prefetch (SMEM) refs
                            node_tbl, ch0_tbl, ch1_tbl,
                            # VMEM inputs (resident across the grid)
                            x_ref, c_base_ref, w_iou_ref, u_cat_ref,
                            b_iou_ref, b_f_ref,
                            # output (VMEM-resident accumulator across levels)
                            h_ref,
                            # scratch
                            c_scr, iou_scr, hcat_scr, ckid_scr, ioux_scr, cb_scr):
    lvl = pl.program_id(0)
    h2 = 2 * h_pad

    @pl.when(lvl == 0)
    def _init():
        # Zero resident h / c state, then precompute iou_x = W_iou(x) + b_iou for ALL nodes
        # once and keep it in VMEM (bias folded exactly once per node).
        h_ref[...] = jnp.zeros_like(h_ref)
        c_scr[...] = jnp.zeros_like(c_scr)
        iou_x = jnp.dot(x_ref[...], w_iou_ref[...],
                        preferred_element_type=jnp.float32) + b_iou_ref[...]
        for nrow in range(n_pad):                     # static unroll: one (1, 3*h_pad) row/node
            iou_scr[nrow] = iou_x[nrow:nrow + 1, :]

    # ---- gather this level's frontier from the VMEM-resident state --------------------
    for r in range(m_pad):                            # static unroll over padded frontier rows
        nid = node_tbl[lvl, r]
        k0 = ch0_tbl[lvl, r]
        k1 = ch1_tbl[lvl, r]
        hcat_scr[r:r + 1, 0:h_pad] = h_ref[k0]
        hcat_scr[r:r + 1, h_pad:h2] = h_ref[k1]
        ckid_scr[r:r + 1, 0:h_pad] = c_scr[k0]
        ckid_scr[r:r + 1, h_pad:h2] = c_scr[k1]
        ioux_scr[r:r + 1, :] = iou_scr[nid]
        cb_scr[r:r + 1, :] = c_base_ref[nid]

    # ---- one fused MXU matmul for U_f and U_iou, then gates (all slices 128-aligned) ---
    h_cat = hcat_scr[...]                                                  # [M, 2*h_pad]
    hu = jnp.dot(h_cat, u_cat_ref[...], preferred_element_type=jnp.float32)  # [M, 5*h_pad]
    f = jax.nn.sigmoid(hu[:, 0:h2] + b_f_ref[...])                         # forget gates
    fc = f * ckid_scr[...]
    c_red = fc[:, 0:h_pad] + fc[:, h_pad:h2]                               # sum_k f_k * c_k
    iou = ioux_scr[...] + hu[:, h2:]                                       # W_iou(x)+b_iou+U_iou(h_cat)
    i_g = jax.nn.sigmoid(iou[:, 0:h_pad])
    o_g = jax.nn.sigmoid(iou[:, h_pad:h2])
    u_g = jnp.tanh(iou[:, h2:])
    c_new = i_g * u_g + cb_scr[...] + c_red                                # c_base only for leaves
    h_new = o_g * jnp.tanh(c_new)

    # ---- scatter results back into the resident per-node state -------------------------
    for r in range(m_pad):
        nid = node_tbl[lvl, r]
        h_ref[nid] = h_new[r:r + 1, :]
        c_scr[nid] = c_new[r:r + 1, :]


# ----------------------------------------------------------------------------
# TreeLSTM forward (leaves_to_root, n-ary cell) — single fused pallas_call
# ----------------------------------------------------------------------------

def tree_lstm_forward(params, nodes_embeddings, leaf_ids, levels, h, c):
    """Equivalent of TreeLSTM.forward(..., direction='leaves_to_root'), eval mode.

    leaf_ids: zero-in-degree node ids.
    levels:   list of (node_ids[M], children_ids[M, 2]) in topological (leaves->root) order.
    `h` is unused (every node's hidden state is produced by apply_node_func);
    `c` seeds the cell state of leaf nodes only.
    """
    hsz = int(params["h_size"])
    n_nodes, xsz = nodes_embeddings.shape

    h_pad = _round_up(hsz, 128)            # lane-dense gates / outputs
    x_pad_sz = _round_up(xsz, 128)
    n_pad = _round_up(n_nodes + 1, 8)      # +1 spare row == dummy node (zero h / c)
    dummy = n_nodes

    # ---- static level schedule (host side), padded to a fixed frontier width ----------
    leaf_np = np.asarray(leaf_ids, dtype=np.int32)
    frontiers = [(leaf_np, None)] + [(np.asarray(nids, np.int32), np.asarray(ch, np.int32))
                                     for nids, ch in levels]
    n_levels = len(frontiers)
    m_pad = max(8, _round_up(max(f[0].shape[0] for f in frontiers), 8))

    node_tbl = np.full((n_levels, m_pad), dummy, np.int32)
    ch0_tbl = np.full((n_levels, m_pad), dummy, np.int32)
    ch1_tbl = np.full((n_levels, m_pad), dummy, np.int32)
    for l, (nids, ch) in enumerate(frontiers):
        m = nids.shape[0]
        node_tbl[l, :m] = nids
        if ch is not None:
            ch0_tbl[l, :m] = ch[:, 0]
            ch1_tbl[l, :m] = ch[:, 1]

    # ---- lane/row-padded operands -------------------------------------------------------
    x_p = jnp.zeros((n_pad, x_pad_sz), jnp.float32).at[:n_nodes, :xsz].set(
        nodes_embeddings.astype(jnp.float32))
    # Initial cell state is only consumed by zero-in-degree (leaf) nodes.
    c_base = jnp.zeros((n_pad, h_pad), jnp.float32).at[leaf_np, :hsz].set(
        c[leaf_np, :].astype(jnp.float32))
    c_base = c_base.reshape(n_pad, 1, h_pad)

    w_iou_p = _embed_blocks(params["w_iou_t"], 1, 3, xsz, hsz, x_pad_sz, h_pad)
    u_f_p = _embed_blocks(params["u_f_t"], 2, 2, hsz, hsz, h_pad, h_pad)
    u_iou_p = _embed_blocks(params["u_iou_t"], 2, 3, hsz, hsz, h_pad, h_pad)
    u_cat_p = jnp.concatenate([u_f_p, u_iou_p], axis=1)      # [2*h_pad, 5*h_pad]
    b_iou_p = _embed_blocks(params["b_iou"], 1, 3, 1, hsz, 1, h_pad)
    b_f_p = _embed_blocks(params["b_f"], 1, 2, 1, hsz, 1, h_pad)
    # TODO(synk): optionally store weights / h_cat in bf16 (f32 accumulate) on v6e/v7x.

    kern = functools.partial(_tree_lstm_fused_kernel, n_pad, m_pad, h_pad)
    const2 = lambda l, *_: (0, 0)
    const3 = lambda l, *_: (0, 0, 0)

    h_out = pl.pallas_call(
        kern,
        out_shape=jax.ShapeDtypeStruct((n_pad, 1, h_pad), jnp.float32),
        grid_spec=pltpu.PrefetchScalarGridSpec(
            num_scalar_prefetch=3,
            grid=(n_levels,),
            in_specs=[
                pl.BlockSpec((n_pad, x_pad_sz), const2),          # x (node embeddings)
                pl.BlockSpec((n_pad, 1, h_pad), const3),          # c_base (leaf c0, masked)
                pl.BlockSpec((x_pad_sz, 3 * h_pad), const2),      # W_iou^T
                pl.BlockSpec((2 * h_pad, 5 * h_pad), const2),     # [U_f^T | U_iou^T] merged
                pl.BlockSpec((1, 3 * h_pad), const2),             # b_iou
                pl.BlockSpec((1, 2 * h_pad), const2),             # b_f
            ],
            out_specs=pl.BlockSpec((n_pad, 1, h_pad), const3),    # h state, VMEM-resident
            scratch_shapes=[
                pltpu.VMEM((n_pad, 1, h_pad), jnp.float32),       # c state
                pltpu.VMEM((n_pad, 1, 3 * h_pad), jnp.float32),   # W_iou(x)+b_iou per node
                pltpu.VMEM((m_pad, 2 * h_pad), jnp.float32),      # gathered h_cat
                pltpu.VMEM((m_pad, 2 * h_pad), jnp.float32),      # gathered child c
                pltpu.VMEM((m_pad, 3 * h_pad), jnp.float32),      # gathered iou_x
                pltpu.VMEM((m_pad, h_pad), jnp.float32),          # gathered c_base
            ],
        ),
        compiler_params=pltpu.CompilerParams(
            dimension_semantics=("arbitrary",)),    # levels carry state -> sequential
    )(jnp.asarray(node_tbl), jnp.asarray(ch0_tbl), jnp.asarray(ch1_tbl),
      x_p, c_base, w_iou_p, u_cat_p, b_iou_p, b_f_p)

    # nn.Dropout(p=0.3) in eval mode is identity.
    # TODO(synk): training-mode dropout (scaled Bernoulli mask via pltpu PRNG) not implemented.
    return h_out.reshape(n_pad, h_pad)[:n_nodes, :hsz]


# ----------------------------------------------------------------------------
# Pure-JAX reference (mirrors the PyTorch/DGL semantics) for verification
# ----------------------------------------------------------------------------

def tree_lstm_reference(params, x, leaf_ids, levels, h, c):
    hsz = params["h_size"]
    iou_w = x @ params["w_iou_t"]
    h_all, c_all = h, c

    def apply_node(iou, c_base):
        iou = iou + params["b_iou"]
        i, o, u = iou[:, :hsz], iou[:, hsz:2 * hsz], iou[:, 2 * hsz:]
        i, o, u = jax.nn.sigmoid(i), jax.nn.sigmoid(o), jnp.tanh(u)
        cc = i * u + c_base
        return o * jnp.tanh(cc), cc

    hl, cl = apply_node(iou_w[leaf_ids], c[leaf_ids])
    h_all = h_all.at[leaf_ids].set(hl)
    c_all = c_all.at[leaf_ids].set(cl)

    for node_ids, children in levels:
        m = node_ids.shape[0]
        h_cat = h_all[children].reshape(m, 2 * hsz)
        f = jax.nn.sigmoid(h_cat @ params["u_f_t"] + params["b_f"]).reshape(m, 2, hsz)
        c_red = jnp.sum(f * c_all[children], axis=1)
        iou = iou_w[node_ids] + h_cat @ params["u_iou_t"]
        hn, cn = apply_node(iou, c_red)
        h_all = h_all.at[node_ids].set(hn)
        c_all = c_all.at[node_ids].set(cn)
    return h_all


# ----------------------------------------------------------------------------
# Main
# ----------------------------------------------------------------------------

if __name__ == "__main__":
    X_SIZE = 16     # node_embedding_size
    H_SIZE = 32     # hidden_size
    N_NODES = 7     # complete binary tree: 0 <- (1,2); 1 <- (3,4); 2 <- (5,6)

    key = jax.random.PRNGKey(0)
    k_x, k_c, k_wiou, k_uiou, k_uf, k_bf = jax.random.split(key, 6)

    params = {
        "h_size": H_SIZE,
        # W_iou: Linear(x_size, 3H, bias=False)  -> stored transposed [X, 3H]
        "w_iou_t": jax.random.normal(k_wiou, (X_SIZE, 3 * H_SIZE), jnp.float32) * 0.1,
        # U_iou: Linear(2H, 3H, bias=False)      -> stored transposed [2H, 3H]
        "u_iou_t": jax.random.normal(k_uiou, (2 * H_SIZE, 3 * H_SIZE), jnp.float32) * 0.1,
        # U_f: Linear(2H, 2H) with bias          -> stored transposed [2H, 2H], bias [1, 2H]
        "u_f_t": jax.random.normal(k_uf, (2 * H_SIZE, 2 * H_SIZE), jnp.float32) * 0.1,
        "b_f": jax.random.normal(k_bf, (1, 2 * H_SIZE), jnp.float32) * 0.1,
        # b_iou parameter is initialized to zeros in the module.
        "b_iou": jnp.zeros((1, 3 * H_SIZE), jnp.float32),
    }

    # Tree (edges child -> parent, propagation leaves_to_root), topological frontiers:
    leaf_ids = jnp.array([3, 4, 5, 6], dtype=jnp.int32)
    levels = [
        (jnp.array([1, 2], dtype=jnp.int32), jnp.array([[3, 4], [5, 6]], dtype=jnp.int32)),
        (jnp.array([0], dtype=jnp.int32), jnp.array([[1, 2]], dtype=jnp.int32)),
    ]

    nodes_embeddings = jax.random.normal(k_x, (N_NODES, X_SIZE), jnp.float32)
    h0 = jnp.zeros((N_NODES, H_SIZE), jnp.float32)
    c0 = jax.random.normal(k_c, (N_NODES, H_SIZE), jnp.float32) * 0.1

    h_out = tree_lstm_forward(params, nodes_embeddings, leaf_ids, levels, h0, c0)
    h_out = jax.block_until_ready(h_out)

    h_ref = tree_lstm_reference(params, nodes_embeddings, leaf_ids, levels, h0, c0)
    h_ref = jax.block_until_ready(h_ref)

    np.testing.assert_allclose(np.asarray(h_out), np.asarray(h_ref), rtol=1e-5, atol=1e-5)
    print("KERNEL_OK")
</pallas_src>

<mosaic_0001>
module attributes {stable_mosaic.version = 11 : i64} {
  func.func @_tree_lstm_fused_kernel(%arg0: i32, %arg1: memref<3x8xi32, #tpu.memory_space<smem>>, %arg2: memref<3x8xi32, #tpu.memory_space<smem>>, %arg3: memref<3x8xi32, #tpu.memory_space<smem>>, %arg4: memref<8x128xf32, #tpu.memory_space<vmem>>, %arg5: memref<8x1x128xf32, #tpu.memory_space<vmem>>, %arg6: memref<128x384xf32, #tpu.memory_space<vmem>>, %arg7: memref<256x640xf32, #tpu.memory_space<vmem>>, %arg8: memref<1x384xf32, #tpu.memory_space<vmem>>, %arg9: memref<1x256xf32, #tpu.memory_space<vmem>>, %arg10: memref<8x1x128xf32, #tpu.memory_space<vmem>>, %arg11: memref<8x1x128xf32, #tpu.memory_space<vmem>>, %arg12: memref<8x1x384xf32, #tpu.memory_space<vmem>>, %arg13: memref<8x256xf32, #tpu.memory_space<vmem>>, %arg14: memref<8x256xf32, #tpu.memory_space<vmem>>, %arg15: memref<8x384xf32, #tpu.memory_space<vmem>>, %arg16: memref<8x128xf32, #tpu.memory_space<vmem>>) attributes {dimension_semantics = [#tpu.dimension_semantics<arbitrary>], iteration_bounds = array<i64: 3>, scalar_prefetch = 3 : i64, scratch_operands = 6 : i64, tpu.core_type = #tpu.core_type<tc>, window_params = [{pipeline_mode = #tpu.pipeline_mode<synchronous>, transform_indices = @transform_0, window_bounds = array<i64: 8, 128>}, {pipeline_mode = #tpu.pipeline_mode<synchronous>, transform_indices = @transform_1, window_bounds = array<i64: 8, 1, 128>}, {pipeline_mode = #tpu.pipeline_mode<synchronous>, transform_indices = @transform_2, window_bounds = array<i64: 128, 384>}, {pipeline_mode = #tpu.pipeline_mode<synchronous>, transform_indices = @transform_3, window_bounds = array<i64: 256, 640>}, {pipeline_mode = #tpu.pipeline_mode<synchronous>, transform_indices = @transform_4, window_bounds = array<i64: 1, 384>}, {pipeline_mode = #tpu.pipeline_mode<synchronous>, transform_indices = @transform_5, window_bounds = array<i64: 1, 256>}, {pipeline_mode = #tpu.pipeline_mode<synchronous>, transform_indices = @transform_6, window_bounds = array<i64: 8, 1, 128>}]} {
    %c0_i32 = arith.constant 0 : i32
    %0 = arith.cmpi eq, %arg0, %c0_i32 : i32
    %1 = arith.extui %0 : i1 to i32
    %c0_i32_0 = arith.constant 0 : i32
    %2 = arith.cmpi ne, %1, %c0_i32_0 : i32
    scf.if %2 {
      %cst_263 = arith.constant 0.000000e+00 : f32
      %379 = vector.broadcast %cst_263 : f32 to vector<8x1x128xf32>
      %c0_264 = arith.constant 0 : index
      %c0_265 = arith.constant 0 : index
      %c0_266 = arith.constant 0 : index
      %380 = vector.load %arg10[%c0_264, %c0_265, %c0_266] : memref<8x1x128xf32, #tpu.memory_space<vmem>>, vector<8x1x128xf32>
      tpu.vector_store %arg10[%c0_264, %c0_265, %c0_266], %379 {strides = array<i32>} : memref<8x1x128xf32, #tpu.memory_space<vmem>>, vector<8x1x128xf32>,
      %cst_267 = arith.constant 0.000000e+00 : f32
      %381 = vector.broadcast %cst_267 : f32 to vector<8x1x128xf32>
      %c0_268 = arith.constant 0 : index
      %c0_269 = arith.constant 0 : index
      %c0_270 = arith.constant 0 : index
      %382 = vector.load %arg11[%c0_268, %c0_269, %c0_270] : memref<8x1x128xf32, #tpu.memory_space<vmem>>, vector<8x1x128xf32>
      tpu.vector_store %arg11[%c0_268, %c0_269, %c0_270], %381 {strides = array<i32>} : memref<8x1x128xf32, #tpu.memory_space<vmem>>, vector<8x1x128xf32>,
      %c0_271 = arith.constant 0 : index
      %c0_272 = arith.constant 0 : index
      %383 = vector.load %arg4[%c0_271, %c0_272] : memref<8x128xf32, #tpu.memory_space<vmem>>, vector<8x128xf32>
      %c0_273 = arith.constant 0 : index
      %c0_274 = arith.constant 0 : index
      %384 = vector.load %arg6[%c0_273, %c0_274] : memref<128x384xf32, #tpu.memory_space<vmem>>, vector<128x384xf32>
      %cst_275 = arith.constant dense<0.000000e+00> : vector<8x384xf32>
      %385 = tpu.matmul %383, %384, %cst_275 {dimension_numbers = #tpu.dot_dimension_numbers<[1], [0], [0], [1], [0, 0, 1, 1], [], []>} : vector<8x128xf32>, vector<128x384xf32>, vector<8x384xf32> -> vector<8x384xf32>
      %c0_276 = arith.constant 0 : index
      %c0_277 = arith.constant 0 : index
      %386 = vector.load %arg8[%c0_276, %c0_277] : memref<1x384xf32, #tpu.memory_space<vmem>>, vector<1x384xf32>
      %387 = vector.broadcast %386 : vector<1x384xf32> to vector<8x384xf32>
      %388 = arith.addf %385, %387 : vector<8x384xf32>
      %389 = vector.extract_strided_slice %388 {offsets = [0, 0], sizes = [1, 384], strides = [1, 1]} : vector<8x384xf32> to vector<1x384xf32>
      %c0_278 = arith.constant 0 : index
      %c0_279 = arith.constant 0 : index
      %c0_280 = arith.constant 0 : index
      %390 = vector.load %arg12[%c0_278, %c0_279, %c0_280] : memref<8x1x384xf32, #tpu.memory_space<vmem>>, vector<1x1x384xf32>
      %391 = vector.shape_cast %390 : vector<1x1x384xf32> to vector<1x384xf32>
      %392 = vector.shape_cast %389 : vector<1x384xf32> to vector<1x1x384xf32>
      tpu.vector_store %arg12[%c0_278, %c0_279, %c0_280], %392 {strides = array<i32>} : memref<8x1x384xf32, #tpu.memory_space<vmem>>, vector<1x1x384xf32>,
      %393 = vector.extract_strided_slice %388 {offsets = [1, 0], sizes = [1, 384], strides = [1, 1]} : vector<8x384xf32> to vector<1x384xf32>
      %c1_281 = arith.constant 1 : index
      %c0_282 = arith.constant 0 : index
      %c0_283 = arith.constant 0 : index
      %394 = vector.load %arg12[%c1_281, %c0_282, %c0_283] : memref<8x1x384xf32, #tpu.memory_space<vmem>>, vector<1x1x384xf32>
      %395 = vector.shape_cast %394 : vector<1x1x384xf32> to vector<1x384xf32>
      %396 = vector.shape_cast %393 : vector<1x384xf32> to vector<1x1x384xf32>
      tpu.vector_store %arg12[%c1_281, %c0_282, %c0_283], %396 {strides = array<i32>} : memref<8x1x384xf32, #tpu.memory_space<vmem>>, vector<1x1x384xf32>,
      %397 = vector.extract_strided_slice %388 {offsets = [2, 0], sizes = [1, 384], strides = [1, 1]} : vector<8x384xf32> to vector<1x384xf32>
      %c2_284 = arith.constant 2 : index
      %c0_285 = arith.constant 0 : index
      %c0_286 = arith.constant 0 : index
      %398 = vector.load %arg12[%c2_284, %c0_285, %c0_286] : memref<8x1x384xf32, #tpu.memory_space<vmem>>, vector<1x1x384xf32>
      %399 = vector.shape_cast %398 : vector<1x1x384xf32> to vector<1x384xf32>
      %400 = vector.shape_cast %397 : vector<1x384xf32> to vector<1x1x384xf32>
      tpu.vector_store %arg12[%c2_284, %c0_285, %c0_286], %400 {strides = array<i32>} : memref<8x1x384xf32, #tpu.memory_space<vmem>>, vector<1x1x384xf32>,
      %401 = vector.extract_strided_slice %388 {offsets = [3, 0], sizes = [1, 384], strides = [1, 1]} : vector<8x384xf32> to vector<1x384xf32>
      %c3_287 = arith.constant 3 : index
      %c0_288 = arith.constant 0 : index
      %c0_289 = arith.constant 0 : index
      %402 = vector.load %arg12[%c3_287, %c0_288, %c0_289] : memref<8x1x384xf32, #tpu.memory_space<vmem>>, vector<1x1x384xf32>
      %403 = vector.shape_cast %402 : vector<1x1x384xf32> to vector<1x384xf32>
      %404 = vector.shape_cast %401 : vector<1x384xf32> to vector<1x1x384xf32>
      tpu.vector_store %arg12[%c3_287, %c0_288, %c0_289], %404 {strides = array<i32>} : memref<8x1x384xf32, #tpu.memory_space<vmem>>, vector<1x1x384xf32>,
      %405 = vector.extract_strided_slice %388 {offsets = [4, 0], sizes = [1, 384], strides = [1, 1]} : vector<8x384xf32> to vector<1x384xf32>
      %c4_290 = arith.constant 4 : index
      %c0_291 = arith.constant 0 : index
      %c0_292 = arith.constant 0 : index
      %406 = vector.load %arg12[%c4_290, %c0_291, %c0_292] : memref<8x1x384xf32, #tpu.memory_space<vmem>>, vector<1x1x384xf32>
      %407 = vector.shape_cast %406 : vector<1x1x384xf32> to vector<1x384xf32>
      %408 = vector.shape_cast %405 : vector<1x384xf32> to vector<1x1x384xf32>
      tpu.vector_store %arg12[%c4_290, %c0_291, %c0_292], %408 {strides = array<i32>} : memref<8x1x384xf32, #tpu.memory_space<vmem>>, vector<1x1x384xf32>,
      %409 = vector.extract_strided_slice %388 {offsets = [5, 0], sizes = [1, 384], strides = [1, 1]} : vector<8x384xf32> to vector<1x384xf32>
      %c5_293 = arith.constant 5 : index
      %c0_294 = arith.constant 0 : index
      %c0_295 = arith.constant 0 : index
      %410 = vector.load %arg12[%c5_293, %c0_294, %c0_295] : memref<8x1x384xf32, #tpu.memory_space<vmem>>, vector<1x1x384xf32>
      %411 = vector.shape_cast %410 : vector<1x1x384xf32> to vector<1x384xf32>
      %412 = vector.shape_cast %409 : vector<1x384xf32> to vector<1x1x384xf32>
      tpu.vector_store %arg12[%c5_293, %c0_294, %c0_295], %412 {strides = array<i32>} : memref<8x1x384xf32, #tpu.memory_space<vmem>>, vector<1x1x384xf32>,
      %413 = vector.extract_strided_slice %388 {offsets = [6, 0], sizes = [1, 384], strides = [1, 1]} : vector<8x384xf32> to vector<1x384xf32>
      %c6_296 = arith.constant 6 : index
      %c0_297 = arith.constant 0 : index
      %c0_298 = arith.constant 0 : index
      %414 = vector.load %arg12[%c6_296, %c0_297, %c0_298] : memref<8x1x384xf32, #tpu.memory_space<vmem>>, vector<1x1x384xf32>
      %415 = vector.shape_cast %414 : vector<1x1x384xf32> to vector<1x384xf32>
      %416 = vector.shape_cast %413 : vector<1x384xf32> to vector<1x1x384xf32>
      tpu.vector_store %arg12[%c6_296, %c0_297, %c0_298], %416 {strides = array<i32>} : memref<8x1x384xf32, #tpu.memory_space<vmem>>, vector<1x1x384xf32>,
      %417 = vector.extract_strided_slice %388 {offsets = [7, 0], sizes = [1, 384], strides = [1, 1]} : vector<8x384xf32> to vector<1x384xf32>
      %c7_299 = arith.constant 7 : index
      %c0_300 = arith.constant 0 : index
      %c0_301 = arith.constant 0 : index
      %418 = vector.load %arg12[%c7_299, %c0_300, %c0_301] : memref<8x1x384xf32, #tpu.memory_space<vmem>>, vector<1x1x384xf32>
      %419 = vector.shape_cast %418 : vector<1x1x384xf32> to vector<1x384xf32>
      %420 = vector.shape_cast %417 : vector<1x384xf32> to vector<1x1x384xf32>
      tpu.vector_store %arg12[%c7_299, %c0_300, %c0_301], %420 {strides = array<i32>} : memref<8x1x384xf32, #tpu.memory_space<vmem>>, vector<1x1x384xf32>,
    } else {
    }
    %3 = arith.index_cast %arg0 : i32 to index
    %c0 = arith.constant 0 : index
    %4 = memref.load %arg1[%3, %c0] : memref<3x8xi32, #tpu.memory_space<smem>>
    %5 = arith.index_cast %arg0 : i32 to index
    %c0_1 = arith.constant 0 : index
    %6 = memref.load %arg2[%5, %c0_1] : memref<3x8xi32, #tpu.memory_space<smem>>
    %7 = arith.index_cast %arg0 : i32 to index
    %c0_2 = arith.constant 0 : index
    %8 = memref.load %arg3[%7, %c0_2] : memref<3x8xi32, #tpu.memory_space<smem>>
    %9 = arith.index_cast %6 : i32 to index
    %c0_3 = arith.constant 0 : index
    %c0_4 = arith.constant 0 : index
    %10 = vector.load %arg10[%9, %c0_3, %c0_4] : memref<8x1x128xf32, #tpu.memory_space<vmem>>, vector<1x1x128xf32>
    %11 = vector.shape_cast %10 : vector<1x1x128xf32> to vector<1x128xf32>
    %c0_5 = arith.constant 0 : index
    %c0_6 = arith.constant 0 : index
    %12 = vector.load %arg13[%c0_5, %c0_6] : memref<8x256xf32, #tpu.memory_space<vmem>>, vector<1x128xf32>
    tpu.vector_store %arg13[%c0_5, %c0_6], %11 {strides = array<i32>} : memref<8x256xf32, #tpu.memory_space<vmem>>, vector<1x128xf32>,
    %13 = arith.index_cast %8 : i32 to index
    %c0_7 = arith.constant 0 : index
    %c0_8 = arith.constant 0 : index
    %14 = vector.load %arg10[%13, %c0_7, %c0_8] : memref<8x1x128xf32, #tpu.memory_space<vmem>>, vector<1x1x128xf32>
    %15 = vector.shape_cast %14 : vector<1x1x128xf32> to vector<1x128xf32>
    %c0_9 = arith.constant 0 : index
    %c128 = arith.constant 128 : index
    %16 = vector.load %arg13[%c0_9, %c128] : memref<8x256xf32, #tpu.memory_space<vmem>>, vector<1x128xf32>
    tpu.vector_store %arg13[%c0_9, %c128], %15 {strides = array<i32>} : memref<8x256xf32, #tpu.memory_space<vmem>>, vector<1x128xf32>,
    %17 = arith.index_cast %6 : i32 to index
    %c0_10 = arith.constant 0 : index
    %c0_11 = arith.constant 0 : index
    %18 = vector.load %arg11[%17, %c0_10, %c0_11] : memref<8x1x128xf32, #tpu.memory_space<vmem>>, vector<1x1x128xf32>
    %19 = vector.shape_cast %18 : vector<1x1x128xf32> to vector<1x128xf32>
    %c0_12 = arith.constant 0 : index
    %c0_13 = arith.constant 0 : index
    %20 = vector.load %arg14[%c0_12, %c0_13] : memref<8x256xf32, #tpu.memory_space<vmem>>, vector<1x128xf32>
    tpu.vector_store %arg14[%c0_12, %c0_13], %19 {strides = array<i32>} : memref<8x256xf32, #tpu.memory_space<vmem>>, vector<1x128xf32>,
    %21 = arith.index_cast %8 : i32 to index
    %c0_14 = arith.constant 0 : index
    %c0_15 = arith.constant 0 : index
    %22 = vector.load %arg11[%21, %c0_14, %c0_15] : memref<8x1x128xf32, #tpu.memory_space<vmem>>, vector<1x1x128xf32>
    %23 = vector.shape_cast %22 : vector<1x1x128xf32> to vector<1x128xf32>
    %c0_16 = arith.constant 0 : index
    %c128_17 = arith.constant 128 : index
    %24 = vector.load %arg14[%c0_16, %c128_17] : memref<8x256xf32, #tpu.memory_space<vmem>>, vector<1x128xf32>
    tpu.vector_store %arg14[%c0_16, %c128_17], %23 {strides = array<i32>} : memref<8x256xf32, #tpu.memory_space<vmem>>, vector<1x128xf32>,
    %25 = arith.index_cast %4 : i32 to index
    %c0_18 = arith.constant 0 : index
    %c0_19 = arith.constant 0 : index
    %26 = vector.load %arg12[%25, %c0_18, %c0_19] : memref<8x1x384xf32, #tpu.memory_space<vmem>>, vector<1x1x384xf32>
    %27 = vector.shape_cast %26 : vector<1x1x384xf32> to vector<1x384xf32>
    %c0_20 = arith.constant 0 : index
    %c0_21 = arith.constant 0 : index
    %28 = vector.load %arg15[%c0_20, %c0_21] : memref<8x384xf32, #tpu.memory_space<vmem>>, vector<1x384xf32>
    tpu.vector_store %arg15[%c0_20, %c0_21], %27 {strides = array<i32>} : memref<8x384xf32, #tpu.memory_space<vmem>>, vector<1x384xf32>,
    %29 = arith.index_cast %4 : i32 to index
    %c0_22 = arith.constant 0 : index
    %c0_23 = arith.constant 0 : index
    %30 = vector.load %arg5[%29, %c0_22, %c0_23] : memref<8x1x128xf32, #tpu.memory_space<vmem>>, vector<1x1x128xf32>
    %31 = vector.shape_cast %30 : vector<1x1x128xf32> to vector<1x128xf32>
    %c0_24 = arith.constant 0 : index
    %c0_25 = arith.constant 0 : index
    %32 = vector.load %arg16[%c0_24, %c0_25] : memref<8x128xf32, #tpu.memory_space<vmem>>, vector<1x128xf32>
    tpu.vector_store %arg16[%c0_24, %c0_25], %31 {strides = array<i32>} : memref<8x128xf32, #tpu.memory_space<vmem>>, vector<1x128xf32>,
    %33 = arith.index_cast %arg0 : i32 to index
    %c1 = arith.constant 1 : index
    %34 = memref.load %arg1[%33, %c1] : memref<3x8xi32, #tpu.memory_space<smem>>
    %35 = arith.index_cast %arg0 : i32 to index
    %c1_26 = arith.constant 1 : index
    %36 = memref.load %arg2[%35, %c1_26] : memref<3x8xi32, #tpu.memory_space<smem>>
    %37 = arith.index_cast %arg0 : i32 to index
    %c1_27 = arith.constant 1 : index
    %38 = memref.load %arg3[%37, %c1_27] : memref<3x8xi32, #tpu.memory_space<smem>>
    %39 = arith.index_cast %36 : i32 to index
    %c0_28 = arith.constant 0 : index
    %c0_29 = arith.constant 0 : index
    %40 = vector.load %arg10[%39, %c0_28, %c0_29] : memref<8x1x128xf32, #tpu.memory_space<vmem>>, vector<1x1x128xf32>
    %41 = vector.shape_cast %40 : vector<1x1x128xf32> to vector<1x128xf32>
    %c1_30 = arith.constant 1 : index
    %c0_31 = arith.constant 0 : index
    %42 = vector.load %arg13[%c1_30, %c0_31] : memref<8x256xf32, #tpu.memory_space<vmem>>, vector<1x128xf32>
    tpu.vector_store %arg13[%c1_30, %c0_31], %41 {strides = array<i32>} : memref<8x256xf32, #tpu.memory_space<vmem>>, vector<1x128xf32>,
    %43 = arith.index_cast %38 : i32 to index
    %c0_32 = arith.constant 0 : index
    %c0_33 = arith.constant 0 : index
    %44 = vector.load %arg10[%43, %c0_32, %c0_33] : memref<8x1x128xf32, #tpu.memory_space<vmem>>, vector<1x1x128xf32>
    %45 = vector.shape_cast %44 : vector<1x1x128xf32> to vector<1x128xf32>
    %c1_34 = arith.constant 1 : index
    %c128_35 = arith.constant 128 : index
    %46 = vector.load %arg13[%c1_34, %c128_35] : memref<8x256xf32, #tpu.memory_space<vmem>>, vector<1x128xf32>
    tpu.vector_store %arg13[%c1_34, %c128_35], %45 {strides = array<i32>} : memref<8x256xf32, #tpu.memory_space<vmem>>, vector<1x128xf32>,
    %47 = arith.index_cast %36 : i32 to index
    %c0_36 = arith.constant 0 : index
    %c0_37 = arith.constant 0 : index
    %48 = vector.load %arg11[%47, %c0_36, %c0_37] : memref<8x1x128xf32, #tpu.memory_space<vmem>>, vector<1x1x128xf32>
    %49 = vector.shape_cast %48 : vector<1x1x128xf32> to vector<1x128xf32>
    %c1_38 = arith.constant 1 : index
    %c0_39 = arith.constant 0 : index
    %50 = vector.load %arg14[%c1_38, %c0_39] : memref<8x256xf32, #tpu.memory_space<vmem>>, vector<1x128xf32>
    tpu.vector_store %arg14[%c1_38, %c0_39], %49 {strides = array<i32>} : memref<8x256xf32, #tpu.memory_space<vmem>>, vector<1x128xf32>,
    %51 = arith.index_cast %38 : i32 to index
    %c0_40 = arith.constant 0 : index
    %c0_41 = arith.constant 0 : index
    %52 = vector.load %arg11[%51, %c0_40, %c0_41] : memref<8x1x128xf32, #tpu.memory_space<vmem>>, vector<1x1x128xf32>
    %53 = vector.shape_cast %52 : vector<1x1x128xf32> to vector<1x128xf32>
    %c1_42 = arith.constant 1 : index
    %c128_43 = arith.constant 128 : index
    %54 = vector.load %arg14[%c1_42, %c128_43] : memref<8x256xf32, #tpu.memory_space<vmem>>, vector<1x128xf32>
    tpu.vector_store %arg14[%c1_42, %c128_43], %53 {strides = array<i32>} : memref<8x256xf32, #tpu.memory_space<vmem>>, vector<1x128xf32>,
    %55 = arith.index_cast %34 : i32 to index
    %c0_44 = arith.constant 0 : index
    %c0_45 = arith.constant 0 : index
    %56 = vector.load %arg12[%55, %c0_44, %c0_45] : memref<8x1x384xf32, #tpu.memory_space<vmem>>, vector<1x1x384xf32>
    %57 = vector.shape_cast %56 : vector<1x1x384xf32> to vector<1x384xf32>
    %c1_46 = arith.constant 1 : index
    %c0_47 = arith.constant 0 : index
    %58 = vector.load %arg15[%c1_46, %c0_47] : memref<8x384xf32, #tpu.memory_space<vmem>>, vector<1x384xf32>
    tpu.vector_store %arg15[%c1_46, %c0_47], %57 {strides = array<i32>} : memref<8x384xf32, #tpu.memory_space<vmem>>, vector<1x384xf32>,
    %59 = arith.index_cast %34 : i32 to index
    %c0_48 = arith.constant 0 : index
    %c0_49 = arith.constant 0 : index
    %60 = vector.load %arg5[%59, %c0_48, %c0_49] : memref<8x1x128xf32, #tpu.memory_space<vmem>>, vector<1x1x128xf32>
    %61 = vector.shape_cast %60 : vector<1x1x128xf32> to vector<1x128xf32>
    %c1_50 = arith.constant 1 : index
    %c0_51 = arith.constant 0 : index
    %62 = vector.load %arg16[%c1_50, %c0_51] : memref<8x128xf32, #tpu.memory_space<vmem>>, vector<1x128xf32>
    tpu.vector_store %arg16[%c1_50, %c0_51], %61 {strides = array<i32>} : memref<8x128xf32, #tpu.memory_space<vmem>>, vector<1x128xf32>,
    %63 = arith.index_cast %arg0 : i32 to index
    %c2 = arith.constant 2 : index
    %64 = memref.load %arg1[%63, %c2] : memref<3x8xi32, #tpu.memory_space<smem>>
    %65 = arith.index_cast %arg0 : i32 to index
    %c2_52 = arith.constant 2 : index
    %66 = memref.load %arg2[%65, %c2_52] : memref<3x8xi32, #tpu.memory_space<smem>>
    %67 = arith.index_cast %arg0 : i32 to index
    %c2_53 = arith.constant 2 : index
    %68 = memref.load %arg3[%67, %c2_53] : memref<3x8xi32, #tpu.memory_space<smem>>
    %69 = arith.index_cast %66 : i32 to index
    %c0_54 = arith.constant 0 : index
    %c0_55 = arith.constant 0 : index
    %70 = vector.load %arg10[%69, %c0_54, %c0_55] : memref<8x1x128xf32, #tpu.memory_space<vmem>>, vector<1x1x128xf32>
    %71 = vector.shape_cast %70 : vector<1x1x128xf32> to vector<1x128xf32>
    %c2_56 = arith.constant 2 : index
    %c0_57 = arith.constant 0 : index
    %72 = vector.load %arg13[%c2_56, %c0_57] : memref<8x256xf32, #tpu.memory_space<vmem>>, vector<1x128xf32>
    tpu.vector_store %arg13[%c2_56, %c0_57], %71 {strides = array<i32>} : memref<8x256xf32, #tpu.memory_space<vmem>>, vector<1x128xf32>,
    %73 = arith.index_cast %68 : i32 to index
    %c0_58 = arith.constant 0 : index
    %c0_59 = arith.constant 0 : index
    %74 = vector.load %arg10[%73, %c0_58, %c0_59] : memref<8x1x128xf32, #tpu.memory_space<vmem>>, vector<1x1x128xf32>
    %75 = vector.shape_cast %74 : vector<1x1x128xf32> to vector<1x128xf32>
    %c2_60 = arith.constant 2 : index
    %c128_61 = arith.constant 128 : index
    %76 = vector.load %arg13[%c2_60, %c128_61] : memref<8x256xf32, #tpu.memory_space<vmem>>, vector<1x128xf32>
    tpu.vector_store %arg13[%c2_60, %c128_61], %75 {strides = array<i32>} : memref<8x256xf32, #tpu.memory_space<vmem>>, vector<1x128xf32>,
    %77 = arith.index_cast %66 : i32 to index
    %c0_62 = arith.constant 0 : index
    %c0_63 = arith.constant 0 : index
    %78 = vector.load %arg11[%77, %c0_62, %c0_63] : memref<8x1x128xf32, #tpu.memory_space<vmem>>, vector<1x1x128xf32>
    %79 = vector.shape_cast %78 : vector<1x1x128xf32> to vector<1x128xf32>
    %c2_64 = arith.constant 2 : index
    %c0_65 = arith.constant 0 : index
    %80 = vector.load %arg14[%c2_64, %c0_65] : memref<8x256xf32, #tpu.memory_space<vmem>>, vector<1x128xf32>
    tpu.vector_store %arg14[%c2_64, %c0_65], %79 {strides = array<i32>} : memref<8x256xf32, #tpu.memory_space<vmem>>, vector<1x128xf32>,
    %81 = arith.index_cast %68 : i32 to index
    %c0_66 = arith.constant 0 : index
    %c0_67 = arith.constant 0 : index
    %82 = vector.load %arg11[%81, %c0_66, %c0_67] : memref<8x1x128xf32, #tpu.memory_space<vmem>>, vector<1x1x128xf32>
    %83 = vector.shape_cast %82 : vector<1x1x128xf32> to vector<1x128xf32>
    %c2_68 = arith.constant 2 : index
    %c128_69 = arith.constant 128 : index
    %84 = vector.load %arg14[%c2_68, %c128_69] : memref<8x256xf32, #tpu.memory_space<vmem>>, vector<1x128xf32>
    tpu.vector_store %arg14[%c2_68, %c128_69], %83 {strides = array<i32>} : memref<8x256xf32, #tpu.memory_space<vmem>>, vector<1x128xf32>,
    %85 = arith.index_cast %64 : i32 to index
    %c0_70 = arith.constant 0 : index
    %c0_71 = arith.constant 0 : index
    %86 = vector.load %arg12[%85, %c0_70, %c0_71] : memref<8x1x384xf32, #tpu.memory_space<vmem>>, vector<1x1x384xf32>
    %87 = vector.shape_cast %86 : vector<1x1x384xf32> to vector<1x384xf32>
    %c2_72 = arith.constant 2 : index
    %c0_73 = arith.constant 0 : index
    %88 = vector.load %arg15[%c2_72, %c0_73] : memref<8x384xf32, #tpu.memory_space<vmem>>, vector<1x384xf32>
    tpu.vector_store %arg15[%c2_72, %c0_73], %87 {strides = array<i32>} : memref<8x384xf32, #tpu.memory_space<vmem>>, vector<1x384xf32>,
    %89 = arith.index_cast %64 : i32 to index
    %c0_74 = arith.constant 0 : index
    %c0_75 = arith.constant 0 : index
    %90 = vector.load %arg5[%89, %c0_74, %c0_75] : memref<8x1x128xf32, #tpu.memory_space<vmem>>, vector<1x1x128xf32>
    %91 = vector.shape_cast %90 : vector<1x1x128xf32> to vector<1x128xf32>
    %c2_76 = arith.constant 2 : index
    %c0_77 = arith.constant 0 : index
    %92 = vector.load %arg16[%c2_76, %c0_77] : memref<8x128xf32, #tpu.memory_space<vmem>>, vector<1x128xf32>
    tpu.vector_store %arg16[%c2_76, %c0_77], %91 {strides = array<i32>} : memref<8x128xf32, #tpu.memory_space<vmem>>, vector<1x128xf32>,
    %93 = arith.index_cast %arg0 : i32 to index
    %c3 = arith.constant 3 : index
    %94 = memref.load %arg1[%93, %c3] : memref<3x8xi32, #tpu.memory_space<smem>>
    %95 = arith.index_cast %arg0 : i32 to index
    %c3_78 = arith.constant 3 : index
    %96 = memref.load %arg2[%95, %c3_78] : memref<3x8xi32, #tpu.memory_space<smem>>
    %97 = arith.index_cast %arg0 : i32 to index
    %c3_79 = arith.constant 3 : index
    %98 = memref.load %arg3[%97, %c3_79] : memref<3x8xi32, #tpu.memory_space<smem>>
    %99 = arith.index_cast %96 : i32 to index
    %c0_80 = arith.constant 0 : index
    %c0_81 = arith.constant 0 : index
    %100 = vector.load %arg10[%99, %c0_80, %c0_81] : memref<8x1x128xf32, #tpu.memory_space<vmem>>, vector<1x1x128xf32>
    %101 = vector.shape_cast %100 : vector<1x1x128xf32> to vector<1x128xf32>
    %c3_82 = arith.constant 3 : index
    %c0_83 = arith.constant 0 : index
    %102 = vector.load %arg13[%c3_82, %c0_83] : memref<8x256xf32, #tpu.memory_space<vmem>>, vector<1x128xf32>
    tpu.vector_store %arg13[%c3_82, %c0_83], %101 {strides = array<i32>} : memref<8x256xf32, #tpu.memory_space<vmem>>, vector<1x128xf32>,
    %103 = arith.index_cast %98 : i32 to index
    %c0_84 = arith.constant 0 : index
    %c0_85 = arith.constant 0 : index
    %104 = vector.load %arg10[%103, %c0_84, %c0_85] : memref<8x1x128xf32, #tpu.memory_space<vmem>>, vector<1x1x128xf32>
    %105 = vector.shape_cast %104 : vector<1x1x128xf32> to vector<1x128xf32>
    %c3_86 = arith.constant 3 : index
    %c128_87 = arith.constant 128 : index
    %106 = vector.load %arg13[%c3_86, %c128_87] : memref<8x256xf32, #tpu.memory_space<vmem>>, vector<1x128xf32>
    tpu.vector_store %arg13[%c3_86, %c128_87], %105 {strides = array<i32>} : memref<8x256xf32, #tpu.memory_space<vmem>>, vector<1x128xf32>,
    %107 = arith.index_cast %96 : i32 to index
    %c0_88 = arith.constant 0 : index
    %c0_89 = arith.constant 0 : index
    %108 = vector.load %arg11[%107, %c0_88, %c0_89] : memref<8x1x128xf32, #tpu.memory_space<vmem>>, vector<1x1x128xf32>
    %109 = vector.shape_cast %108 : vector<1x1x128xf32> to vector<1x128xf32>
    %c3_90 = arith.constant 3 : index
    %c0_91 = arith.constant 0 : index
    %110 = vector.load %arg14[%c3_90, %c0_91] : memref<8x256xf32, #tpu.memory_space<vmem>>, vector<1x128xf32>
    tpu.vector_store %arg14[%c3_90, %c0_91], %109 {strides = array<i32>} : memref<8x256xf32, #tpu.memory_space<vmem>>, vector<1x128xf32>,
    %111 = arith.index_cast %98 : i32 to index
    %c0_92 = arith.constant 0 : index
    %c0_93 = arith.constant 0 : index
    %112 = vector.load %arg11[%111, %c0_92, %c0_93] : memref<8x1x128xf32, #tpu.memory_space<vmem>>, vector<1x1x128xf32>
    %113 = vector.shape_cast %112 : vector<1x1x128xf32> to vector<1x128xf32>
    %c3_94 = arith.constant 3 : index
    %c128_95 = arith.constant 128 : index
    %114 = vector.load %arg14[%c3_94, %c128_95] : memref<8x256xf32, #tpu.memory_space<vmem>>, vector<1x128xf32>
    tpu.vector_store %arg14[%c3_94, %c128_95], %113 {strides = array<i32>} : memref<8x256xf32, #tpu.memory_space<vmem>>, vector<1x128xf32>,
    %115 = arith.index_cast %94 : i32 to index
    %c0_96 = arith.constant 0 : index
    %c0_97 = arith.constant 0 : index
    %116 = vector.load %arg12[%115, %c0_96, %c0_97] : memref<8x1x384xf32, #tpu.memory_space<vmem>>, vector<1x1x384xf32>
    %117 = vector.shape_cast %116 : vector<1x1x384xf32> to vector<1x384xf32>
    %c3_98 = arith.constant 3 : index
    %c0_99 = arith.constant 0 : index
    %118 = vector.load %arg15[%c3_98, %c0_99] : memref<8x384xf32, #tpu.memory_space<vmem>>, vector<1x384xf32>
    tpu.vector_store %arg15[%c3_98, %c0_99], %117 {strides = array<i32>} : memref<8x384xf32, #tpu.memory_space<vmem>>, vector<1x384xf32>,
    %119 = arith.index_cast %94 : i32 to index
    %c0_100 = arith.constant 0 : index
    %c0_101 = arith.constant 0 : index
    %120 = vector.load %arg5[%119, %c0_100, %c0_101] : memref<8x1x128xf32, #tpu.memory_space<vmem>>, vector<1x1x128xf32>
    %121 = vector.shape_cast %120 : vector<1x1x128xf32> to vector<1x128xf32>
    %c3_102 = arith.constant 3 : index
    %c0_103 = arith.constant 0 : index
    %122 = vector.load %arg16[%c3_102, %c0_103] : memref<8x128xf32, #tpu.memory_space<vmem>>, vector<1x128xf32>
    tpu.vector_store %arg16[%c3_102, %c0_103], %121 {strides = array<i32>} : memref<8x128xf32, #tpu.memory_space<vmem>>, vector<1x128xf32>,
    %123 = arith.index_cast %arg0 : i32 to index
    %c4 = arith.constant 4 : index
    %124 = memref.load %arg1[%123, %c4] : memref<3x8xi32, #tpu.memory_space<smem>>
    %125 = arith.index_cast %arg0 : i32 to index
    %c4_104 = arith.constant 4 : index
    %126 = memref.load %arg2[%125, %c4_104] : memref<3x8xi32, #tpu.memory_space<smem>>
    %127 = arith.index_cast %arg0 : i32 to index
    %c4_105 = arith.constant 4 : index
    %128 = memref.load %arg3[%127, %c4_105] : memref<3x8xi32, #tpu.memory_space<smem>>
    %129 = arith.index_cast %126 : i32 to index
    %c0_106 = arith.constant 0 : index
    %c0_107 = arith.constant 0 : index
    %130 = vector.load %arg10[%129, %c0_106, %c0_107] : memref<8x1x128xf32, #tpu.memory_space<vmem>>, vector<1x1x128xf32>
    %131 = vector.shape_cast %130 : vector<1x1x128xf32> to vector<1x128xf32>
    %c4_108 = arith.constant 4 : index
    %c0_109 = arith.constant 0 : index
    %132 = vector.load %arg13[%c4_108, %c0_109] : memref<8x256xf32, #tpu.memory_space<vmem>>, vector<1x128xf32>
    tpu.vector_store %arg13[%c4_108, %c0_109], %131 {strides = array<i32>} : memref<8x256xf32, #tpu.memory_space<vmem>>, vector<1x128xf32>,
    %133 = arith.index_cast %128 : i32 to index
    %c0_110 = arith.constant 0 : index
    %c0_111 = arith.constant 0 : index
    %134 = vector.load %arg10[%133, %c0_110, %c0_111] : memref<8x1x128xf32, #tpu.memory_space<vmem>>, vector<1x1x128xf32>
    %135 = vector.shape_cast %134 : vector<1x1x128xf32> to vector<1x128xf32>
    %c4_112 = arith.constant 4 : index
    %c128_113 = arith.constant 128 : index
    %136 = vector.load %arg13[%c4_112, %c128_113] : memref<8x256xf32, #tpu.memory_space<vmem>>, vector<1x128xf32>
    tpu.vector_store %arg13[%c4_112, %c128_113], %135 {strides = array<i32>} : memref<8x256xf32, #tpu.memory_space<vmem>>, vector<1x128xf32>,
    %137 = arith.index_cast %126 : i32 to index
    %c0_114 = arith.constant 0 : index
    %c0_115 = arith.constant 0 : index
    %138 = vector.load %arg11[%137, %c0_114, %c0_115] : memref<8x1x128xf32, #tpu.memory_space<vmem>>, vector<1x1x128xf32>
    %139 = vector.shape_cast %138 : vector<1x1x128xf32> to vector<1x128xf32>
    %c4_116 = arith.constant 4 : index
    %c0_117 = arith.constant 0 : index
    %140 = vector.load %arg14[%c4_116, %c0_117] : memref<8x256xf32, #tpu.memory_space<vmem>>, vector<1x128xf32>
    tpu.vector_store %arg14[%c4_116, %c0_117], %139 {strides = array<i32>} : memref<8x256xf32, #tpu.memory_space<vmem>>, vector<1x128xf32>,
    %141 = arith.index_cast %128 : i32 to index
    %c0_118 = arith.constant 0 : index
    %c0_119 = arith.constant 0 : index
    %142 = vector.load %arg11[%141, %c0_118, %c0_119] : memref<8x1x128xf32, #tpu.memory_space<vmem>>, vector<1x1x128xf32>
    %143 = vector.shape_cast %142 : vector<1x1x128xf32> to vector<1x128xf32>
    %c4_120 = arith.constant 4 : index
    %c128_121 = arith.constant 128 : index
    %144 = vector.load %arg14[%c4_120, %c128_121] : memref<8x256xf32, #tpu.memory_space<vmem>>, vector<1x128xf32>
    tpu.vector_store %arg14[%c4_120, %c128_121], %143 {strides = array<i32>} : memref<8x256xf32, #tpu.memory_space<vmem>>, vector<1x128xf32>,
    %145 = arith.index_cast %124 : i32 to index
    %c0_122 = arith.constant 0 : index
    %c0_123 = arith.constant 0 : index
    %146 = vector.load %arg12[%145, %c0_122, %c0_123] : memref<8x1x384xf32, #tpu.memory_space<vmem>>, vector<1x1x384xf32>
    %147 = vector.shape_cast %146 : vector<1x1x384xf32> to vector<1x384xf32>
    %c4_124 = arith.constant 4 : index
    %c0_125 = arith.constant 0 : index
    %148 = vector.load %arg15[%c4_124, %c0_125] : memref<8x384xf32, #tpu.memory_space<vmem>>, vector<1x384xf32>
    tpu.vector_store %arg15[%c4_124, %c0_125], %147 {strides = array<i32>} : memref<8x384xf32, #tpu.memory_space<vmem>>, vector<1x384xf32>,
    %149 = arith.index_cast %124 : i32 to index
    %c0_126 = arith.constant 0 : index
    %c0_127 = arith.constant 0 : index
    %150 = vector.load %arg5[%149, %c0_126, %c0_127] : memref<8x1x128xf32, #tpu.memory_space<vmem>>, vector<1x1x128xf32>
    %151 = vector.shape_cast %150 : vector<1x1x128xf32> to vector<1x128xf32>
    %c4_128 = arith.constant 4 : index
    %c0_129 = arith.constant 0 : index
    %152 = vector.load %arg16[%c4_128, %c0_129] : memref<8x128xf32, #tpu.memory_space<vmem>>, vector<1x128xf32>
    tpu.vector_store %arg16[%c4_128, %c0_129], %151 {strides = array<i32>} : memref<8x128xf32, #tpu.memory_space<vmem>>, vector<1x128xf32>,
    %153 = arith.index_cast %arg0 : i32 to index
    %c5 = arith.constant 5 : index
    %154 = memref.load %arg1[%153, %c5] : memref<3x8xi32, #tpu.memory_space<smem>>
    %155 = arith.index_cast %arg0 : i32 to index
    %c5_130 = arith.constant 5 : index
    %156 = memref.load %arg2[%155, %c5_130] : memref<3x8xi32, #tpu.memory_space<smem>>
    %157 = arith.index_cast %arg0 : i32 to index
    %c5_131 = arith.constant 5 : index
    %158 = memref.load %arg3[%157, %c5_131] : memref<3x8xi32, #tpu.memory_space<smem>>
    %159 = arith.index_cast %156 : i32 to index
    %c0_132 = arith.constant 0 : index
    %c0_133 = arith.constant 0 : index
    %160 = vector.load %arg10[%159, %c0_132, %c0_133] : memref<8x1x128xf32, #tpu.memory_space<vmem>>, vector<1x1x128xf32>
    %161 = vector.shape_cast %160 : vector<1x1x128xf32> to vector<1x128xf32>
    %c5_134 = arith.constant 5 : index
    %c0_135 = arith.constant 0 : index
    %162 = vector.load %arg13[%c5_134, %c0_135] : memref<8x256xf32, #tpu.memory_space<vmem>>, vector<1x128xf32>
    tpu.vector_store %arg13[%c5_134, %c0_135], %161 {strides = array<i32>} : memref<8x256xf32, #tpu.memory_space<vmem>>, vector<1x128xf32>,
    %163 = arith.index_cast %158 : i32 to index
    %c0_136 = arith.constant 0 : index
    %c0_137 = arith.constant 0 : index
    %164 = vector.load %arg10[%163, %c0_136, %c0_137] : memref<8x1x128xf32, #tpu.memory_space<vmem>>, vector<1x1x128xf32>
    %165 = vector.shape_cast %164 : vector<1x1x128xf32> to vector<1x128xf32>
    %c5_138 = arith.constant 5 : index
    %c128_139 = arith.constant 128 : index
    %166 = vector.load %arg13[%c5_138, %c128_139] : memref<8x256xf32, #tpu.memory_space<vmem>>, vector<1x128xf32>
    tpu.vector_store %arg13[%c5_138, %c128_139], %165 {strides = array<i32>} : memref<8x256xf32, #tpu.memory_space<vmem>>, vector<1x128xf32>,
    %167 = arith.index_cast %156 : i32 to index
    %c0_140 = arith.constant 0 : index
    %c0_141 = arith.constant 0 : index
    %168 = vector.load %arg11[%167, %c0_140, %c0_141] : memref<8x1x128xf32, #tpu.memory_space<vmem>>, vector<1x1x128xf32>
    %169 = vector.shape_cast %168 : vector<1x1x128xf32> to vector<1x128xf32>
    %c5_142 = arith.constant 5 : index
    %c0_143 = arith.constant 0 : index
    %170 = vector.load %arg14[%c5_142, %c0_143] : memref<8x256xf32, #tpu.memory_space<vmem>>, vector<1x128xf32>
    tpu.vector_store %arg14[%c5_142, %c0_143], %169 {strides = array<i32>} : memref<8x256xf32, #tpu.memory_space<vmem>>, vector<1x128xf32>,
    %171 = arith.index_cast %158 : i32 to index
    %c0_144 = arith.constant 0 : index
    %c0_145 = arith.constant 0 : index
    %172 = vector.load %arg11[%171, %c0_144, %c0_145] : memref<8x1x128xf32, #tpu.memory_space<vmem>>, vector<1x1x128xf32>
    %173 = vector.shape_cast %172 : vector<1x1x128xf32> to vector<1x128xf32>
    %c5_146 = arith.constant 5 : index
    %c128_147 = arith.constant 128 : index
    %174 = vector.load %arg14[%c5_146, %c128_147] : memref<8x256xf32, #tpu.memory_space<vmem>>, vector<1x128xf32>
    tpu.vector_store %arg14[%c5_146, %c128_147], %173 {strides = array<i32>} : memref<8x256xf32, #tpu.memory_space<vmem>>, vector<1x128xf32>,
    %175 = arith.index_cast %154 : i32 to index
    %c0_148 = arith.constant 0 : index
    %c0_149 = arith.constant 0 : index
    %176 = vector.load %arg12[%175, %c0_148, %c0_149] : memref<8x1x384xf32, #tpu.memory_space<vmem>>, vector<1x1x384xf32>
    %177 = vector.shape_cast %176 : vector<1x1x384xf32> to vector<1x384xf32>
    %c5_150 = arith.constant 5 : index
    %c0_151 = arith.constant 0 : index
    %178 = vector.load %arg15[%c5_150, %c0_151] : memref<8x384xf32, #tpu.memory_space<vmem>>, vector<1x384xf32>
    tpu.vector_store %arg15[%c5_150, %c0_151], %177 {strides = array<i32>} : memref<8x384xf32, #tpu.memory_space<vmem>>, vector<1x384xf32>,
    %179 = arith.index_cast %154 : i32 to index
    %c0_152 = arith.constant 0 : index
    %c0_153 = arith.constant 0 : index
    %180 = vector.load %arg5[%179, %c0_152, %c0_153] : memref<8x1x128xf32, #tpu.memory_space<vmem>>, vector<1x1x128xf32>
    %181 = vector.shape_cast %180 : vector<1x1x128xf32> to vector<1x128xf32>
    %c5_154 = arith.constant 5 : index
    %c0_155 = arith.constant 0 : index
    %182 = vector.load %arg16[%c5_154, %c0_155] : memref<8x128xf32, #tpu.memory_space<vmem>>, vector<1x128xf32>
    tpu.vector_store %arg16[%c5_154, %c0_155], %181 {strides = array<i32>} : memref<8x128xf32, #tpu.memory_space<vmem>>, vector<1x128xf32>,
    %183 = arith.index_cast %arg0 : i32 to index
    %c6 = arith.constant 6 : index
    %184 = memref.load %arg1[%183, %c6] : memref<3x8xi32, #tpu.memory_space<smem>>
    %185 = arith.index_cast %arg0 : i32 to index
    %c6_156 = arith.constant 6 : index
    %186 = memref.load %arg2[%185, %c6_156] : memref<3x8xi32, #tpu.memory_space<smem>>
    %187 = arith.index_cast %arg0 : i32 to index
    %c6_157 = arith.constant 6 : index
    %188 = memref.load %arg3[%187, %c6_157] : memref<3x8xi32, #tpu.memory_space<smem>>
    %189 = arith.index_cast %186 : i32 to index
    %c0_158 = arith.constant 0 : index
    %c0_159 = arith.constant 0 : index
    %190 = vector.load %arg10[%189, %c0_158, %c0_159] : memref<8x1x128xf32, #tpu.memory_space<vmem>>, vector<1x1x128xf32>
    %191 = vector.shape_cast %190 : vector<1x1x128xf32> to vector<1x128xf32>
    %c6_160 = arith.constant 6 : index
    %c0_161 = arith.constant 0 : index
    %192 = vector.load %arg13[%c6_160, %c0_161] : memref<8x256xf32, #tpu.memory_space<vmem>>, vector<1x128xf32>
    tpu.vector_store %arg13[%c6_160, %c0_161], %191 {strides = array<i32>} : memref<8x256xf32, #tpu.memory_space<vmem>>, vector<1x128xf32>,
    %193 = arith.index_cast %188 : i32 to index
    %c0_162 = arith.constant 0 : index
    %c0_163 = arith.constant 0 : index
    %194 = vector.load %arg10[%193, %c0_162, %c0_163] : memref<8x1x128xf32, #tpu.memory_space<vmem>>, vector<1x1x128xf32>
    %195 = vector.shape_cast %194 : vector<1x1x128xf32> to vector<1x128xf32>
    %c6_164 = arith.constant 6 : index
    %c128_165 = arith.constant 128 : index
    %196 = vector.load %arg13[%c6_164, %c128_165] : memref<8x256xf32, #tpu.memory_space<vmem>>, vector<1x128xf32>
    tpu.vector_store %arg13[%c6_164, %c128_165], %195 {strides = array<i32>} : memref<8x256xf32, #tpu.memory_space<vmem>>, vector<1x128xf32>,
    %197 = arith.index_cast %186 : i32 to index
    %c0_166 = arith.constant 0 : index
    %c0_167 = arith.constant 0 : index
    %198 = vector.load %arg11[%197, %c0_166, %c0_167] : memref<8x1x128xf32, #tpu.memory_space<vmem>>, vector<1x1x128xf32>
    %199 = vector.shape_cast %198 : vector<1x1x128xf32> to vector<1x128xf32>
    %c6_168 = arith.constant 6 : index
    %c0_169 = arith.constant 0 : index
    %200 = vector.load %arg14[%c6_168, %c0_169] : memref<8x256xf32, #tpu.memory_space<vmem>>, vector<1x128xf32>
    tpu.vector_store %arg14[%c6_168, %c0_169], %199 {strides = array<i32>} : memref<8x256xf32, #tpu.memory_space<vmem>>, vector<1x128xf32>,
    %201 = arith.index_cast %188 : i32 to index
    %c0_170 = arith.constant 0 : index
    %c0_171 = arith.constant 0 : index
    %202 = vector.load %arg11[%201, %c0_170, %c0_171] : memref<8x1x128xf32, #tpu.memory_space<vmem>>, vector<1x1x128xf32>
    %203 = vector.shape_cast %202 : vector<1x1x128xf32> to vector<1x128xf32>
    %c6_172 = arith.constant 6 : index
    %c128_173 = arith.constant 128 : index
    %204 = vector.load %arg14[%c6_172, %c128_173] : memref<8x256xf32, #tpu.memory_space<vmem>>, vector<1x128xf32>
    tpu.vector_store %arg14[%c6_172, %c128_173], %203 {strides = array<i32>} : memref<8x256xf32, #tpu.memory_space<vmem>>, vector<1x128xf32>,
    %205 = arith.index_cast %184 : i32 to index
    %c0_174 = arith.constant 0 : index
    %c0_175 = arith.constant 0 : index
    %206 = vector.load %arg12[%205, %c0_174, %c0_175] : memref<8x1x384xf32, #tpu.memory_space<vmem>>, vector<1x1x384xf32>
    %207 = vector.shape_cast %206 : vector<1x1x384xf32> to vector<1x384xf32>
    %c6_176 = arith.constant 6 : index
    %c0_177 = arith.constant 0 : index
    %208 = vector.load %arg15[%c6_176, %c0_177] : memref<8x384xf32, #tpu.memory_space<vmem>>, vector<1x384xf32>
    tpu.vector_store %arg15[%c6_176, %c0_177], %207 {strides = array<i32>} : memref<8x384xf32, #tpu.memory_space<vmem>>, vector<1x384xf32>,
    %209 = arith.index_cast %184 : i32 to index
    %c0_178 = arith.constant 0 : index
    %c0_179 = arith.constant 0 : index
    %210 = vector.load %arg5[%209, %c0_178, %c0_179] : memref<8x1x128xf32, #tpu.memory_space<vmem>>, vector<1x1x128xf32>
    %211 = vector.shape_cast %210 : vector<1x1x128xf32> to vector<1x128xf32>
    %c6_180 = arith.constant 6 : index
    %c0_181 = arith.constant 0 : index
    %212 = vector.load %arg16[%c6_180, %c0_181] : memref<8x128xf32, #tpu.memory_space<vmem>>, vector<1x128xf32>
    tpu.vector_store %arg16[%c6_180, %c0_181], %211 {strides = array<i32>} : memref<8x128xf32, #tpu.memory_space<vmem>>, vector<1x128xf32>,
    %213 = arith.index_cast %arg0 : i32 to index
    %c7 = arith.constant 7 : index
    %214 = memref.load %arg1[%213, %c7] : memref<3x8xi32, #tpu.memory_space<smem>>
    %215 = arith.index_cast %arg0 : i32 to index
    %c7_182 = arith.constant 7 : index
    %216 = memref.load %arg2[%215, %c7_182] : memref<3x8xi32, #tpu.memory_space<smem>>
    %217 = arith.index_cast %arg0 : i32 to index
    %c7_183 = arith.constant 7 : index
    %218 = memref.load %arg3[%217, %c7_183] : memref<3x8xi32, #tpu.memory_space<smem>>
    %219 = arith.index_cast %216 : i32 to index
    %c0_184 = arith.constant 0 : index
    %c0_185 = arith.constant 0 : index
    %220 = vector.load %arg10[%219, %c0_184, %c0_185] : memref<8x1x128xf32, #tpu.memory_space<vmem>>, vector<1x1x128xf32>
    %221 = vector.shape_cast %220 : vector<1x1x128xf32> to vector<1x128xf32>
    %c7_186 = arith.constant 7 : index
    %c0_187 = arith.constant 0 : index
    %222 = vector.load %arg13[%c7_186, %c0_187] : memref<8x256xf32, #tpu.memory_space<vmem>>, vector<1x128xf32>
    tpu.vector_store %arg13[%c7_186, %c0_187], %221 {strides = array<i32>} : memref<8x256xf32, #tpu.memory_space<vmem>>, vector<1x128xf32>,
    %223 = arith.index_cast %218 : i32 to index
    %c0_188 = arith.constant 0 : index
    %c0_189 = arith.constant 0 : index
    %224 = vector.load %arg10[%223, %c0_188, %c0_189] : memref<8x1x128xf32, #tpu.memory_space<vmem>>, vector<1x1x128xf32>
    %225 = vector.shape_cast %224 : vector<1x1x128xf32> to vector<1x128xf32>
    %c7_190 = arith.constant 7 : index
    %c128_191 = arith.constant 128 : index
    %226 = vector.load %arg13[%c7_190, %c128_191] : memref<8x256xf32, #tpu.memory_space<vmem>>, vector<1x128xf32>
    tpu.vector_store %arg13[%c7_190, %c128_191], %225 {strides = array<i32>} : memref<8x256xf32, #tpu.memory_space<vmem>>, vector<1x128xf32>,
    %227 = arith.index_cast %216 : i32 to index
    %c0_192 = arith.constant 0 : index
    %c0_193 = arith.constant 0 : index
    %228 = vector.load %arg11[%227, %c0_192, %c0_193] : memref<8x1x128xf32, #tpu.memory_space<vmem>>, vector<1x1x128xf32>
    %229 = vector.shape_cast %228 : vector<1x1x128xf32> to vector<1x128xf32>
    %c7_194 = arith.constant 7 : index
    %c0_195 = arith.constant 0 : index
    %230 = vector.load %arg14[%c7_194, %c0_195] : memref<8x256xf32, #tpu.memory_space<vmem>>, vector<1x128xf32>
    tpu.vector_store %arg14[%c7_194, %c0_195], %229 {strides = array<i32>} : memref<8x256xf32, #tpu.memory_space<vmem>>, vector<1x128xf32>,
    %231 = arith.index_cast %218 : i32 to index
    %c0_196 = arith.constant 0 : index
    %c0_197 = arith.constant 0 : index
    %232 = vector.load %arg11[%231, %c0_196, %c0_197] : memref<8x1x128xf32, #tpu.memory_space<vmem>>, vector<1x1x128xf32>
    %233 = vector.shape_cast %232 : vector<1x1x128xf32> to vector<1x128xf32>
    %c7_198 = arith.constant 7 : index
    %c128_199 = arith.constant 128 : index
    %234 = vector.load %arg14[%c7_198, %c128_199] : memref<8x256xf32, #tpu.memory_space<vmem>>, vector<1x128xf32>
    tpu.vector_store %arg14[%c7_198, %c128_199], %233 {strides = array<i32>} : memref<8x256xf32, #tpu.memory_space<vmem>>, vector<1x128xf32>,
    %235 = arith.index_cast %214 : i32 to index
    %c0_200 = arith.constant 0 : index
    %c0_201 = arith.constant 0 : index
    %236 = vector.load %arg12[%235, %c0_200, %c0_201] : memref<8x1x384xf32, #tpu.memory_space<vmem>>, vector<1x1x384xf32>
    %237 = vector.shape_cast %236 : vector<1x1x384xf32> to vector<1x384xf32>
    %c7_202 = arith.constant 7 : index
    %c0_203 = arith.constant 0 : index
    %238 = vector.load %arg15[%c7_202, %c0_203] : memref<8x384xf32, #tpu.memory_space<vmem>>, vector<1x384xf32>
    tpu.vector_store %arg15[%c7_202, %c0_203], %237 {strides = array<i32>} : memref<8x384xf32, #tpu.memory_space<vmem>>, vector<1x384xf32>,
    %239 = arith.index_cast %214 : i32 to index
    %c0_204 = arith.constant 0 : index
    %c0_205 = arith.constant 0 : index
    %240 = vector.load %arg5[%239, %c0_204, %c0_205] : memref<8x1x128xf32, #tpu.memory_space<vmem>>, vector<1x1x128xf32>
    %241 = vector.shape_cast %240 : vector<1x1x128xf32> to vector<1x128xf32>
    %c7_206 = arith.constant 7 : index
    %c0_207 = arith.constant 0 : index
    %242 = vector.load %arg16[%c7_206, %c0_207] : memref<8x128xf32, #tpu.memory_space<vmem>>, vector<1x128xf32>
    tpu.vector_store %arg16[%c7_206, %c0_207], %241 {strides = array<i32>} : memref<8x128xf32, #tpu.memory_space<vmem>>, vector<1x128xf32>,
    %c0_208 = arith.constant 0 : index
    %c0_209 = arith.constant 0 : index
    %243 = vector.load %arg13[%c0_208, %c0_209] : memref<8x256xf32, #tpu.memory_space<vmem>>, vector<8x256xf32>
    %c0_210 = arith.constant 0 : index
    %c0_211 = arith.constant 0 : index
    %244 = vector.load %arg7[%c0_210, %c0_211] : memref<256x640xf32, #tpu.memory_space<vmem>>, vector<256x640xf32>
    %cst = arith.constant dense<0.000000e+00> : vector<8x640xf32>
    %245 = tpu.matmul %243, %244, %cst {dimension_numbers = #tpu.dot_dimension_numbers<[1], [0], [0], [1], [0, 0, 1, 1], [], []>} : vector<8x256xf32>, vector<256x640xf32>, vector<8x640xf32> -> vector<8x640xf32>
    %246 = vector.extract_strided_slice %245 {offsets = [0, 0], sizes = [8, 256], strides = [1, 1]} : vector<8x640xf32> to vector<8x256xf32>
    %c0_212 = arith.constant 0 : index
    %c0_213 = arith.constant 0 : index
    %247 = vector.load %arg9[%c0_212, %c0_213] : memref<1x256xf32, #tpu.memory_space<vmem>>, vector<1x256xf32>
    %248 = vector.broadcast %247 : vector<1x256xf32> to vector<8x256xf32>
    %249 = arith.addf %246, %248 : vector<8x256xf32>
    %250 = arith.negf %249 : vector<8x256xf32>
    %251 = math.exp %250 : vector<8x256xf32>
    %cst_214 = arith.constant 1.000000e+00 : f32
    %252 = vector.broadcast %cst_214 : f32 to vector<8x256xf32>
    %253 = arith.addf %252, %251 : vector<8x256xf32>
    %254 = arith.divf %252, %253 : vector<8x256xf32>
    %c0_215 = arith.constant 0 : index
    %c0_216 = arith.constant 0 : index
    %255 = vector.load %arg14[%c0_215, %c0_216] : memref<8x256xf32, #tpu.memory_space<vmem>>, vector<8x256xf32>
    %256 = arith.mulf %254, %255 : vector<8x256xf32>
    %257 = vector.extract_strided_slice %256 {offsets = [0, 0], sizes = [8, 128], strides = [1, 1]} : vector<8x256xf32> to vector<8x128xf32>
    %258 = vector.extract_strided_slice %256 {offsets = [0, 128], sizes = [8, 128], strides = [1, 1]} : vector<8x256xf32> to vector<8x128xf32>
    %259 = arith.addf %257, %258 : vector<8x128xf32>
    %c0_217 = arith.constant 0 : index
    %c0_218 = arith.constant 0 : index
    %260 = vector.load %arg15[%c0_217, %c0_218] : memref<8x384xf32, #tpu.memory_space<vmem>>, vector<8x384xf32>
    %261 = vector.extract_strided_slice %245 {offsets = [0, 256], sizes = [8, 384], strides = [1, 1]} : vector<8x640xf32> to vector<8x384xf32>
    %262 = arith.addf %260, %261 : vector<8x384xf32>
    %263 = vector.extract_strided_slice %262 {offsets = [0, 0], sizes = [8, 128], strides = [1, 1]} : vector<8x384xf32> to vector<8x128xf32>
    %264 = arith.negf %263 : vector<8x128xf32>
    %265 = math.exp %264 : vector<8x128xf32>
    %cst_219 = arith.constant 1.000000e+00 : f32
    %266 = vector.broadcast %cst_219 : f32 to vector<8x128xf32>
    %267 = arith.addf %266, %265 : vector<8x128xf32>
    %268 = arith.divf %266, %267 : vector<8x128xf32>
    %269 = vector.extract_strided_slice %262 {offsets = [0, 128], sizes = [8, 128], strides = [1, 1]} : vector<8x384xf32> to vector<8x128xf32>
    %270 = arith.negf %269 : vector<8x128xf32>
    %271 = math.exp %270 : vector<8x128xf32>
    %cst_220 = arith.constant 1.000000e+00 : f32
    %272 = vector.broadcast %cst_220 : f32 to vector<8x128xf32>
    %273 = arith.addf %272, %271 : vector<8x128xf32>
    %274 = arith.divf %272, %273 : vector<8x128xf32>
    %275 = vector.extract_strided_slice %262 {offsets = [0, 256], sizes = [8, 128], strides = [1, 1]} : vector<8x384xf32> to vector<8x128xf32>
    %276 = math.tanh %275 : vector<8x128xf32>
    %277 = arith.mulf %268, %276 : vector<8x128xf32>
    %c0_221 = arith.constant 0 : index
    %c0_222 = arith.constant 0 : index
    %278 = vector.load %arg16[%c0_221, %c0_222] : memref<8x128xf32, #tpu.memory_space<vmem>>, vector<8x128xf32>
    %279 = arith.addf %277, %278 : vector<8x128xf32>
    %280 = arith.addf %279, %259 : vector<8x128xf32>
    %281 = math.tanh %280 : vector<8x128xf32>
    %282 = arith.mulf %274, %281 : vector<8x128xf32>
    %283 = arith.index_cast %arg0 : i32 to index
    %c0_223 = arith.constant 0 : index
    %284 = memref.load %arg1[%283, %c0_223] : memref<3x8xi32, #tpu.memory_space<smem>>
    %285 = vector.extract_strided_slice %282 {offsets = [0, 0], sizes = [1, 128], strides = [1, 1]} : vector<8x128xf32> to vector<1x128xf32>
    %286 = arith.index_cast %284 : i32 to index
    %c0_224 = arith.constant 0 : index
    %c0_225 = arith.constant 0 : index
    %287 = vector.load %arg10[%286, %c0_224, %c0_225] : memref<8x1x128xf32, #tpu.memory_space<vmem>>, vector<1x1x128xf32>
    %288 = vector.shape_cast %287 : vector<1x1x128xf32> to vector<1x128xf32>
    %289 = vector.shape_cast %285 : vector<1x128xf32> to vector<1x1x128xf32>
    tpu.vector_store %arg10[%286, %c0_224, %c0_225], %289 {strides = array<i32>} : memref<8x1x128xf32, #tpu.memory_space<vmem>>, vector<1x1x128xf32>,
    %290 = vector.extract_strided_slice %280 {offsets = [0, 0], sizes = [1, 128], strides = [1, 1]} : vector<8x128xf32> to vector<1x128xf32>
    %291 = arith.index_cast %284 : i32 to index
    %c0_226 = arith.constant 0 : index
    %c0_227 = arith.constant 0 : index
    %292 = vector.load %arg11[%291, %c0_226, %c0_227] : memref<8x1x128xf32, #tpu.memory_space<vmem>>, vector<1x1x128xf32>
    %293 = vector.shape_cast %292 : vector<1x1x128xf32> to vector<1x128xf32>
    %294 = vector.shape_cast %290 : vector<1x128xf32> to vector<1x1x128xf32>
    tpu.vector_store %arg11[%291, %c0_226, %c0_227], %294 {strides = array<i32>} : memref<8x1x128xf32, #tpu.memory_space<vmem>>, vector<1x1x128xf32>,
    %295 = arith.index_cast %arg0 : i32 to index
    %c1_228 = arith.constant 1 : index
    %296 = memref.load %arg1[%295, %c1_228] : memref<3x8xi32, #tpu.memory_space<smem>>
    %297 = vector.extract_strided_slice %282 {offsets = [1, 0], sizes = [1, 128], strides = [1, 1]} : vector<8x128xf32> to vector<1x128xf32>
    %298 = arith.index_cast %296 : i32 to index
    %c0_229 = arith.constant 0 : index
    %c0_230 = arith.constant 0 : index
    %299 = vector.load %arg10[%298, %c0_229, %c0_230] : memref<8x1x128xf32, #tpu.memory_space<vmem>>, vector<1x1x128xf32>
    %300 = vector.shape_cast %299 : vector<1x1x128xf32> to vector<1x128xf32>
    %301 = vector.shape_cast %297 : vector<1x128xf32> to vector<1x1x128xf32>
    tpu.vector_store %arg10[%298, %c0_229, %c0_230], %301 {strides = array<i32>} : memref<8x1x128xf32, #tpu.memory_space<vmem>>, vector<1x1x128xf32>,
    %302 = vector.extract_strided_slice %280 {offsets = [1, 0], sizes = [1, 128], strides = [1, 1]} : vector<8x128xf32> to vector<1x128xf32>
    %303 = arith.index_cast %296 : i32 to index
    %c0_231 = arith.constant 0 : index
    %c0_232 = arith.constant 0 : index
    %304 = vector.load %arg11[%303, %c0_231, %c0_232] : memref<8x1x128xf32, #tpu.memory_space<vmem>>, vector<1x1x128xf32>
    %305 = vector.shape_cast %304 : vector<1x1x128xf32> to vector<1x128xf32>
    %306 = vector.shape_cast %302 : vector<1x128xf32> to vector<1x1x128xf32>
    tpu.vector_store %arg11[%303, %c0_231, %c0_232], %306 {strides = array<i32>} : memref<8x1x128xf32, #tpu.memory_space<vmem>>, vector<1x1x128xf32>,
    %307 = arith.index_cast %arg0 : i32 to index
    %c2_233 = arith.constant 2 : index
    %308 = memref.load %arg1[%307, %c2_233] : memref<3x8xi32, #tpu.memory_space<smem>>
    %309 = vector.extract_strided_slice %282 {offsets = [2, 0], sizes = [1, 128], strides = [1, 1]} : vector<8x128xf32> to vector<1x128xf32>
    %310 = arith.index_cast %308 : i32 to index
    %c0_234 = arith.constant 0 : index
    %c0_235 = arith.constant 0 : index
    %311 = vector.load %arg10[%310, %c0_234, %c0_235] : memref<8x1x128xf32, #tpu.memory_space<vmem>>, vector<1x1x128xf32>
    %312 = vector.shape_cast %311 : vector<1x1x128xf32> to vector<1x128xf32>
    %313 = vector.shape_cast %309 : vector<1x128xf32> to vector<1x1x128xf32>
    tpu.vector_store %arg10[%310, %c0_234, %c0_235], %313 {strides = array<i32>} : memref<8x1x128xf32, #tpu.memory_space<vmem>>, vector<1x1x128xf32>,
    %314 = vector.extract_strided_slice %280 {offsets = [2, 0], sizes = [1, 128], strides = [1, 1]} : vector<8x128xf32> to vector<1x128xf32>
    %315 = arith.index_cast %308 : i32 to index
    %c0_236 = arith.constant 0 : index
    %c0_237 = arith.constant 0 : index
    %316 = vector.load %arg11[%315, %c0_236, %c0_237] : memref<8x1x128xf32, #tpu.memory_space<vmem>>, vector<1x1x128xf32>
    %317 = vector.shape_cast %316 : vector<1x1x128xf32> to vector<1x128xf32>
    %318 = vector.shape_cast %314 : vector<1x128xf32> to vector<1x1x128xf32>
    tpu.vector_store %arg11[%315, %c0_236, %c0_237], %318 {strides = array<i32>} : memref<8x1x128xf32, #tpu.memory_space<vmem>>, vector<1x1x128xf32>,
    %319 = arith.index_cast %arg0 : i32 to index
    %c3_238 = arith.constant 3 : index
    %320 = memref.load %arg1[%319, %c3_238] : memref<3x8xi32, #tpu.memory_space<smem>>
    %321 = vector.extract_strided_slice %282 {offsets = [3, 0], sizes = [1, 128], strides = [1, 1]} : vector<8x128xf32> to vector<1x128xf32>
    %322 = arith.index_cast %320 : i32 to index
    %c0_239 = arith.constant 0 : index
    %c0_240 = arith.constant 0 : index
    %323 = vector.load %arg10[%322, %c0_239, %c0_240] : memref<8x1x128xf32, #tpu.memory_space<vmem>>, vector<1x1x128xf32>
    %324 = vector.shape_cast %323 : vector<1x1x128xf32> to vector<1x128xf32>
    %325 = vector.shape_cast %321 : vector<1x128xf32> to vector<1x1x128xf32>
    tpu.vector_store %arg10[%322, %c0_239, %c0_240], %325 {strides = array<i32>} : memref<8x1x128xf32, #tpu.memory_space<vmem>>, vector<1x1x128xf32>,
    %326 = vector.extract_strided_slice %280 {offsets = [3, 0], sizes = [1, 128], strides = [1, 1]} : vector<8x128xf32> to vector<1x128xf32>
    %327 = arith.index_cast %320 : i32 to index
    %c0_241 = arith.constant 0 : index
    %c0_242 = arith.constant 0 : index
    %328 = vector.load %arg11[%327, %c0_241, %c0_242] : memref<8x1x128xf32, #tpu.memory_space<vmem>>, vector<1x1x128xf32>
    %329 = vector.shape_cast %328 : vector<1x1x128xf32> to vector<1x128xf32>
    %330 = vector.shape_cast %326 : vector<1x128xf32> to vector<1x1x128xf32>
    tpu.vector_store %arg11[%327, %c0_241, %c0_242], %330 {strides = array<i32>} : memref<8x1x128xf32, #tpu.memory_space<vmem>>, vector<1x1x128xf32>,
    %331 = arith.index_cast %arg0 : i32 to index
    %c4_243 = arith.constant 4 : index
    %332 = memref.load %arg1[%331, %c4_243] : memref<3x8xi32, #tpu.memory_space<smem>>
    %333 = vector.extract_strided_slice %282 {offsets = [4, 0], sizes = [1, 128], strides = [1, 1]} : vector<8x128xf32> to vector<1x128xf32>
    %334 = arith.index_cast %332 : i32 to index
    %c0_244 = arith.constant 0 : index
    %c0_245 = arith.constant 0 : index
    %335 = vector.load %arg10[%334, %c0_244, %c0_245] : memref<8x1x128xf32, #tpu.memory_space<vmem>>, vector<1x1x128xf32>
    %336 = vector.shape_cast %335 : vector<1x1x128xf32> to vector<1x128xf32>
    %337 = vector.shape_cast %333 : vector<1x128xf32> to vector<1x1x128xf32>
    tpu.vector_store %arg10[%334, %c0_244, %c0_245], %337 {strides = array<i32>} : memref<8x1x128xf32, #tpu.memory_space<vmem>>, vector<1x1x128xf32>,
    %338 = vector.extract_strided_slice %280 {offsets = [4, 0], sizes = [1, 128], strides = [1, 1]} : vector<8x128xf32> to vector<1x128xf32>
    %339 = arith.index_cast %332 : i32 to index
    %c0_246 = arith.constant 0 : index
    %c0_247 = arith.constant 0 : index
    %340 = vector.load %arg11[%339, %c0_246, %c0_247] : memref<8x1x128xf32, #tpu.memory_space<vmem>>, vector<1x1x128xf32>
    %341 = vector.shape_cast %340 : vector<1x1x128xf32> to vector<1x128xf32>
    %342 = vector.shape_cast %338 : vector<1x128xf32> to vector<1x1x128xf32>
    tpu.vector_store %arg11[%339, %c0_246, %c0_247], %342 {strides = array<i32>} : memref<8x1x128xf32, #tpu.memory_space<vmem>>, vector<1x1x128xf32>,
    %343 = arith.index_cast %arg0 : i32 to index
    %c5_248 = arith.constant 5 : index
    %344 = memref.load %arg1[%343, %c5_248] : memref<3x8xi32, #tpu.memory_space<smem>>
    %345 = vector.extract_strided_slice %282 {offsets = [5, 0], sizes = [1, 128], strides = [1, 1]} : vector<8x128xf32> to vector<1x128xf32>
    %346 = arith.index_cast %344 : i32 to index
    %c0_249 = arith.constant 0 : index
    %c0_250 = arith.constant 0 : index
    %347 = vector.load %arg10[%346, %c0_249, %c0_250] : memref<8x1x128xf32, #tpu.memory_space<vmem>>, vector<1x1x128xf32>
    %348 = vector.shape_cast %347 : vector<1x1x128xf32> to vector<1x128xf32>
    %349 = vector.shape_cast %345 : vector<1x128xf32> to vector<1x1x128xf32>
    tpu.vector_store %arg10[%346, %c0_249, %c0_250], %349 {strides = array<i32>} : memref<8x1x128xf32, #tpu.memory_space<vmem>>, vector<1x1x128xf32>,
    %350 = vector.extract_strided_slice %280 {offsets = [5, 0], sizes = [1, 128], strides = [1, 1]} : vector<8x128xf32> to vector<1x128xf32>
    %351 = arith.index_cast %344 : i32 to index
    %c0_251 = arith.constant 0 : index
    %c0_252 = arith.constant 0 : index
    %352 = vector.load %arg11[%351, %c0_251, %c0_252] : memref<8x1x128xf32, #tpu.memory_space<vmem>>, vector<1x1x128xf32>
    %353 = vector.shape_cast %352 : vector<1x1x128xf32> to vector<1x128xf32>
    %354 = vector.shape_cast %350 : vector<1x128xf32> to vector<1x1x128xf32>
    tpu.vector_store %arg11[%351, %c0_251, %c0_252], %354 {strides = array<i32>} : memref<8x1x128xf32, #tpu.memory_space<vmem>>, vector<1x1x128xf32>,
    %355 = arith.index_cast %arg0 : i32 to index
    %c6_253 = arith.constant 6 : index
    %356 = memref.load %arg1[%355, %c6_253] : memref<3x8xi32, #tpu.memory_space<smem>>
    %357 = vector.extract_strided_slice %282 {offsets = [6, 0], sizes = [1, 128], strides = [1, 1]} : vector<8x128xf32> to vector<1x128xf32>
    %358 = arith.index_cast %356 : i32 to index
    %c0_254 = arith.constant 0 : index
    %c0_255 = arith.constant 0 : index
    %359 = vector.load %arg10[%358, %c0_254, %c0_255] : memref<8x1x128xf32, #tpu.memory_space<vmem>>, vector<1x1x128xf32>
    %360 = vector.shape_cast %359 : vector<1x1x128xf32> to vector<1x128xf32>
    %361 = vector.shape_cast %357 : vector<1x128xf32> to vector<1x1x128xf32>
    tpu.vector_store %arg10[%358, %c0_254, %c0_255], %361 {strides = array<i32>} : memref<8x1x128xf32, #tpu.memory_space<vmem>>, vector<1x1x128xf32>,
    %362 = vector.extract_strided_slice %280 {offsets = [6, 0], sizes = [1, 128], strides = [1, 1]} : vector<8x128xf32> to vector<1x128xf32>
    %363 = arith.index_cast %356 : i32 to index
    %c0_256 = arith.constant 0 : index
    %c0_257 = arith.constant 0 : index
    %364 = vector.load %arg11[%363, %c0_256, %c0_257] : memref<8x1x128xf32, #tpu.memory_space<vmem>>, vector<1x1x128xf32>
    %365 = vector.shape_cast %364 : vector<1x1x128xf32> to vector<1x128xf32>
    %366 = vector.shape_cast %362 : vector<1x128xf32> to vector<1x1x128xf32>
    tpu.vector_store %arg11[%363, %c0_256, %c0_257], %366 {strides = array<i32>} : memref<8x1x128xf32, #tpu.memory_space<vmem>>, vector<1x1x128xf32>,
    %367 = arith.index_cast %arg0 : i32 to index
    %c7_258 = arith.constant 7 : index
    %368 = memref.load %arg1[%367, %c7_258] : memref<3x8xi32, #tpu.memory_space<smem>>
    %369 = vector.extract_strided_slice %282 {offsets = [7, 0], sizes = [1, 128], strides = [1, 1]} : vector<8x128xf32> to vector<1x128xf32>
    %370 = arith.index_cast %368 : i32 to index
    %c0_259 = arith.constant 0 : index
    %c0_260 = arith.constant 0 : index
    %371 = vector.load %arg10[%370, %c0_259, %c0_260] : memref<8x1x128xf32, #tpu.memory_space<vmem>>, vector<1x1x128xf32>
    %372 = vector.shape_cast %371 : vector<1x1x128xf32> to vector<1x128xf32>
    %373 = vector.shape_cast %369 : vector<1x128xf32> to vector<1x1x128xf32>
    tpu.vector_store %arg10[%370, %c0_259, %c0_260], %373 {strides = array<i32>} : memref<8x1x128xf32, #tpu.memory_space<vmem>>, vector<1x1x128xf32>,
    %374 = vector.extract_strided_slice %280 {offsets = [7, 0], sizes = [1, 128], strides = [1, 1]} : vector<8x128xf32> to vector<1x128xf32>
    %375 = arith.index_cast %368 : i32 to index
    %c0_261 = arith.constant 0 : index
    %c0_262 = arith.constant 0 : index
    %376 = vector.load %arg11[%375, %c0_261, %c0_262] : memref<8x1x128xf32, #tpu.memory_space<vmem>>, vector<1x1x128xf32>
    %377 = vector.shape_cast %376 : vector<1x1x128xf32> to vector<1x128xf32>
    %378 = vector.shape_cast %374 : vector<1x128xf32> to vector<1x1x128xf32>
    tpu.vector_store %arg11[%375, %c0_261, %c0_262], %378 {strides = array<i32>} : memref<8x1x128xf32, #tpu.memory_space<vmem>>, vector<1x1x128xf32>,
    return
  }
  func.func @transform_0(%arg0: i32, %arg1: memref<3x8xi32, #tpu.memory_space<smem>>, %arg2: memref<3x8xi32, #tpu.memory_space<smem>>, %arg3: memref<3x8xi32, #tpu.memory_space<smem>>) -> (i32, i32) {
    %c0_i32 = arith.constant 0 : i32
    %c0_i32_0 = arith.constant 0 : i32
    %c0_i32_1 = arith.constant 0 : i32
    return %c0_i32, %c0_i32_0 : i32, i32
  }
  func.func @transform_1(%arg0: i32, %arg1: memref<3x8xi32, #tpu.memory_space<smem>>, %arg2: memref<3x8xi32, #tpu.memory_space<smem>>, %arg3: memref<3x8xi32, #tpu.memory_space<smem>>) -> (i32, i32, i32) {
    %c0_i32 = arith.constant 0 : i32
    %c0_i32_0 = arith.constant 0 : i32
    %c0_i32_1 = arith.constant 0 : i32
    %c0_i32_2 = arith.constant 0 : i32
    return %c0_i32, %c0_i32_0, %c0_i32_1 : i32, i32, i32
  }
  func.func @transform_2(%arg0: i32, %arg1: memref<3x8xi32, #tpu.memory_space<smem>>, %arg2: memref<3x8xi32, #tpu.memory_space<smem>>, %arg3: memref<3x8xi32, #tpu.memory_space<smem>>) -> (i32, i32) {
    %c0_i32 = arith.constant 0 : i32
    %c0_i32_0 = arith.constant 0 : i32
    %c0_i32_1 = arith.constant 0 : i32
    return %c0_i32, %c0_i32_0 : i32, i32
  }
  func.func @transform_3(%arg0: i32, %arg1: memref<3x8xi32, #tpu.memory_space<smem>>, %arg2: memref<3x8xi32, #tpu.memory_space<smem>>, %arg3: memref<3x8xi32, #tpu.memory_space<smem>>) -> (i32, i32) {
    %c0_i32 = arith.constant 0 : i32
    %c0_i32_0 = arith.constant 0 : i32
    %c0_i32_1 = arith.constant 0 : i32
    return %c0_i32, %c0_i32_0 : i32, i32
  }
  func.func @transform_4(%arg0: i32, %arg1: memref<3x8xi32, #tpu.memory_space<smem>>, %arg2: memref<3x8xi32, #tpu.memory_space<smem>>, %arg3: memref<3x8xi32, #tpu.memory_space<smem>>) -> (i32, i32) {
    %c0_i32 = arith.constant 0 : i32
    %c0_i32_0 = arith.constant 0 : i32
    %c0_i32_1 = arith.constant 0 : i32
    return %c0_i32, %c0_i32_0 : i32, i32
  }
  func.func @transform_5(%arg0: i32, %arg1: memref<3x8xi32, #tpu.memory_space<smem>>, %arg2: memref<3x8xi32, #tpu.memory_space<smem>>, %arg3: memref<3x8xi32, #tpu.memory_space<smem>>) -> (i32, i32) {
    %c0_i32 = arith.constant 0 : i32
    %c0_i32_0 = arith.constant 0 : i32
    %c0_i32_1 = arith.constant 0 : i32
    return %c0_i32, %c0_i32_0 : i32, i32
  }
  func.func @transform_6(%arg0: i32, %arg1: memref<3x8xi32, #tpu.memory_space<smem>>, %arg2: memref<3x8xi32, #tpu.memory_space<smem>>, %arg3: memref<3x8xi32, #tpu.memory_space<smem>>) -> (i32, i32, i32) {
    %c0_i32 = arith.constant 0 : i32
    %c0_i32_0 = arith.constant 0 : i32
    %c0_i32_1 = arith.constant 0 : i32
    %c0_i32_2 = arith.constant 0 : i32
    return %c0_i32, %c0_i32_0, %c0_i32_1 : i32, i32, i32
  }
}

</mosaic_0001>

<bundles_post_ra>
// kernel: tpu_custom_call.1
= control target key start
LH: loop header
LB: loop body
LE: loop exit
PB: predicated region body
PF: predicated region fallthrough
CT: control target
= control target key end

     0   :  { %s1808_s30 = smov [#allocation9]   ;;  %s1809_s12 = smov [#allocation10]   ;;  %s2262_s0 = inlined_call_operand.hbm [shape: s32[3,8], index: 0, kind: input, shape index: {}]   ;;  %s2263_s3 = inlined_call_operand.hbm [shape: f32[8,128], index: 3, kind: input, shape index: {}]   ;;  %s2264_s4 = inlined_call_operand.hbm [shape: f32[8,1,128], index: 4, kind: input, shape index: {}]   ;;  %s2265_s5 = inlined_call_operand.hbm [shape: f32[128,384], index: 5, kind: input, shape index: {}]   ;;  %s2266_s6 = inlined_call_operand.hbm [shape: f32[256,640], index: 6, kind: input, shape index: {}]   ;;  %s2267_s7 = inlined_call_operand.vmem [shape: f32[1,384], index: 7, kind: input, shape index: {}]   ;;  %s2268_s8 = inlined_call_operand.vmem [shape: f32[1,256], index: 8, kind: input, shape index: {}]   ;;  %s2269_s9 = inlined_call_operand.hbm [shape: f32[8,1,128], index: 9, kind: output, shape index: {}]   ;;  %s2270_s1 = inlined_call_operand.hbm [shape: s32[3,8], index: 1, kind: input, shape index: {}]   ;;  %s2271_s2 = inlined_call_operand.hbm [shape: s32[3,8], index: 2, kind: input, shape index: {}]  }
   0x1   :  { %2272 = sst [smem:[#allocation26_spill]] %s2263_s3  ;;  %s1810_s15 = smov [#allocation11]  }
   0x2   :  { %2273 = sst [smem:[#allocation27_spill]] %s2264_s4 }
   0x3   :  { %2274 = sst [smem:[#allocation28_spill]] %s2265_s5 }
   0x4   :  { %15 = dma.hbm_to_smem %s2262_s0, 64, %s1808_s30, [#allocation8] }
   0x5   :  { %17 = dma.hbm_to_smem %s2270_s1, 64, %s1809_s12, [#allocation8] }
   0x6   :  { %19 = dma.hbm_to_smem %s2271_s2, 64, %s1810_s15, [#allocation8] }
   0x7   :  { %1786 = dma.done.wait [#allocation8], 192 }
   0x8   :  { %1787 = vsyncadd [#allocation8], 4294967104 }
   0x9   :  { %21 = sfence }
   0xa   :  { %22 = vsyncpa [#allocation13], 0 }
   0xb   :  { %23 = vsyncpa [#allocation16], 0 }
   0xc   :  { %24 = vsyncpa [#allocation19], 0 }
   0xd   :  { %25 = vsyncpa [#allocation14], 0  ;;  %s1886_s18 = smov 0  }
   0xe LB: > { %s1811_s0 = smov [#allocation15]   ;;  %s1892_s2 = sadd.s32 4294967295, %s1806_s18   ;;  %s1806_s18 = sphi %s1886_s18, %s31_s18  }
   0xf   : > { %s206_s1 = sshll.u32 %s1811_s0, 4  ;;  %p1433_p0 = scmp.ge.s32.totalorder %s1806_s18, 1  ;;  %s207_s1 = int_to_ptr.vmem [resolvable:$true] %s206_s1 }
  0x10   : > { %p183_p1 = scmp.lt.s32.totalorder %s1806_s18, 4  ;;  %p1573_p3 = scmp.eq.s32.totalorder %s1892_s2, 0 }
  0x11   : > { %s1812_s20 = smov [#allocation12]   ;;  %s1813_s23 = smov [#allocation17]  }
  0x12   : > { %p1898_p4 = pnand %p1433_p0, %p183_p1  ;;  %s196_s21 = sshll.u32 %s1812_s20, 4  ;;  %s197_s21 = int_to_ptr.vmem [resolvable:$true] %s196_s21 }
  0x13   : > { %s219_s24 = sshll.u32 %s1813_s23, 4  ;;  %s1665_s25 = scalar_lea.vmem %s207_s1, 128  ;;  %s1910_s24 = int_to_ptr.vmem [resolvable:$true] %s219_s24 }
  0x14   : > { %p1560_p5 = pneg %p1898_p4  ;;  %p1666_p8 = scmp.ne.s32.totalorder %s207_s1, %s1665_s25 }
  0x15   : > { %p1673_p11 = scmp.lt.s32.totalorder %s207_s1, %s207_s1  ;;  %p1674_p12 = scmp.lt.s32.totalorder %s1665_s25, %s1665_s25 }
  0x16   : > { %p1906_p6 = pnand %p1573_p3, %p1560_p5 }
  0x17   : > { %p1675_p13 = por %p1674_p12, %p1673_p11 }
  0x18   : > { %p1656_p7 = pneg %p1906_p6 }
  0x1a   : > { %p1668_p9 = pnand %p1666_p8, %p1656_p7 }
  0x1c   : > { %p1669_p10 = pneg %p1668_p9 }
  0x1e   : > { %p1676_p0 = pnand %p1675_p13, %p1669_p10 }
  0x20   : > { %1679 = shalt.err (!%p1676_p0)
}
  0x21   : > { %s1814_s26 = smov 16   ;;  %s1815_s27 = smov 1  }
  0x22   : > { %s2277_s4 = sld [smem:[#allocation27_spill]]  ;;  %s1691_s30 = scalar_lea.vmem %s197_s21, 128 }
  0x23   : > { %p1692_p1 = scmp.ne.s32.totalorder %s197_s21, %s1691_s30  ;;  %p1699_p9 = scmp.lt.s32.totalorder %s197_s21, %s197_s21 }
  0x24   : > { %p1700_p2 = scmp.lt.s32.totalorder %s1691_s30, %s1691_s30 }
  0x25   : > { %p1694_p5 = pnand %p1692_p1, %p1656_p7 }
  0x26   : > { %p1701_p11 = por %p1700_p2, %p1699_p9 }
  0x27   : > { %p1695_p8 = pneg %p1694_p5 }
  0x28   : > { %1566 = dma.hbm_to_vmem [thread:$0]  (!%p1906_p6), %s2277_s4, 128, %s207_s1, [#allocation16], %s1814_s26, %s1814_s26, %s1815_s27  }
  0x29   : > { %p1702_p10 = pnand %p1701_p11, %p1695_p8 }
  0x2b   : > { %1705 = shalt.err (!%p1702_p10)
}
  0x2c   : > { %s2278_s3 = sld [smem:[#allocation26_spill]]  ;;  %s1717_s12 = scalar_lea.vmem %s1910_s24, 6144 }
  0x2d   : > { %p1718_p12 = scmp.ne.s32.totalorder %s1910_s24, %s1717_s12  ;;  %p1725_p2 = scmp.lt.s32.totalorder %s1910_s24, %s1910_s24 }
  0x2e   : > { %p1726_p1 = scmp.lt.s32.totalorder %s1717_s12, %s1717_s12 }
  0x2f   : > { %p1720_p13 = pnand %p1718_p12, %p1656_p7 }
  0x30   : > { %p1727_p5 = por %p1726_p1, %p1725_p2 }
  0x31   : > { %p1721_p0 = pneg %p1720_p13 }
  0x32   : > { %1563 = dma.hbm_to_vmem [thread:$0]  (!%p1906_p6), %s2278_s3, 128, %s197_s21, [#allocation13]  }
  0x33   : > { %p1728_p8 = pnand %p1727_p5, %p1721_p0 }
  0x35   : > { %1731 = shalt.err (!%p1728_p8)
}
  0x36   : > { %s1816_s13 = smov 384   ;;  %s1817_s14 = smov 24  }
  0x37   : > { %s2279_s5 = sld [smem:[#allocation28_spill]]  ;;  %s1818_s17 = smov [#allocation18]  }
  0x38   : > { %s232_s0 = sshll.u32 %s1818_s17, 4  ;;  %s233_s0 = int_to_ptr.vmem [resolvable:$true] %s232_s0 }
  0x39   : > { %s1743_s1 = scalar_lea.vmem %s233_s0, 20480  ;;  %p1751_p12 = scmp.lt.s32.totalorder %s233_s0, %s233_s0 }
  0x3a   : > { %p1744_p9 = scmp.ne.s32.totalorder %s233_s0, %s1743_s1  ;;  %p1752_p13 = scmp.lt.s32.totalorder %s1743_s1, %s1743_s1 }
  0x3c   : > { %p1746_p11 = pnand %p1744_p9, %p1656_p7  ;;  %p1753_p0 = por %p1752_p13, %p1751_p12 }
  0x3d   : > { %1569 = dma.hbm_to_vmem [thread:$0]  (!%p1906_p6), %s2279_s5, 6144, %s1910_s24, [#allocation16], %s1816_s13, %s1816_s13, %s1817_s14  }
  0x3e   : > { %p1747_p10 = pneg %p1746_p11 }
  0x40   : > { %p1754_p2 = pnand %p1753_p0, %p1747_p10 }
  0x42   : > { %1757 = shalt.err (!%p1754_p2)
}
  0x43   : > { %s1819_s20 = smov 640   ;;  %s1820_s21 = smov 40  }
  0x44   : > { %1572 = dma.hbm_to_vmem [thread:$0]  (!%p1906_p6), %s2266_s6, 20480, %s233_s0, [#allocation19], %s1819_s20, %s1819_s20, %s1820_s21  }
  0x45   : > { %254 = sbr.rel (%p1898_p4) target bundleno = 686 (0x2ae), region = 44 }
  0x4a   : > { %1789 = dma.done.wait (%p1573_p3), [#allocation13], 128  }
  0x4b   : > { %1791 = vsyncadd (%p1573_p3), [#allocation13], 4294967168 }
  0x4c   : > { %1793 = dma.done.wait (%p1573_p3), [#allocation16], 6272  }
  0x4d   : > { %1795 = vsyncadd (%p1573_p3), [#allocation16], 4294961024 }
  0x4e   : > { %1797 = dma.done.wait (%p1573_p3), [#allocation19], 20480  }
  0x4f   : > { %1799 = vsyncadd (%p1573_p3), [#allocation19], 4294946816  ;;  %p2280_p4 = scmp.ne.s32.totalorder %s1892_s2, 0 }
  0x51   : > { %289 = sbr.rel (%p2280_p4) target bundleno = 329 (0x149), region = 64 }
  0x56   : > { %v353_v0 = vld [vmem:[#allocation17 + $0x170] sm:$0xff]  ;;  %v352_v1 = vld [vmem:[#allocation17 + $0x168] sm:$0xff]  ;;  %v354_v2 = vld [vmem:[#allocation17 + $0x178] sm:$0xff]  ;;  %v1821_v3 = vmov 0.0   ;;  %vm1822_vm0 = vmmov 0   ;;  %v357_v50 = vlaneseq }
  0x57   : > { %372 = vmatprep.subr.mxu0 %v353_v0  ;;  %290 = vst [vmem:[#allocation20] sm:$0x1] %v1821_v3  ;;  %291 = vst [vmem:[#allocation20 + $0x1] sm:$0x1] %v1821_v3  ;;  %1505 = vmatprep.subr.mxu1 %v1821_v3  ;;  %v350_v4 = vld [vmem:[#allocation17 + $0x158] sm:$0xff]  ;;  %v349_v5 = vld [vmem:[#allocation17 + $0x150] sm:$0xff] }
  0x58   : > { %292 = vst [vmem:[#allocation20 + $0x2] sm:$0x1] %v1821_v3  ;;  %293 = vst [vmem:[#allocation20 + $0x3] sm:$0x1] %v1821_v3  ;;  %v351_v6 = vld [vmem:[#allocation17 + $0x160] sm:$0xff]  ;;  %373 = vmatpush1.msra.mxu0 %v352_v1  ;;  %1506 = vmatpush3.msra.mxu1 %v354_v2  ;;  %v346_v8 = vld [vmem:[#allocation17 + $0x138] sm:$0xff] }
  0x59   : > { %294 = vst [vmem:[#allocation20 + $0x4] sm:$0x1] %v1821_v3  ;;  %295 = vst [vmem:[#allocation20 + $0x5] sm:$0x1] %v1821_v3  ;;  %v347_v7 = vld [vmem:[#allocation17 + $0x140] sm:$0xff]  ;;  %374 = vmatprep.subr.mxu0 %v350_v4  ;;  %1507 = vmatprep.subr.mxu1 %v1821_v3  ;;  %v348_v9 = vld [vmem:[#allocation17 + $0x148] sm:$0xff] }
  0x5a   : > { %296 = vst [vmem:[#allocation20 + $0x6] sm:$0x1] %v1821_v3  ;;  %297 = vst [vmem:[#allocation20 + $0x7] sm:$0x1] %v1821_v3  ;;  %375 = vmatpush1.msra.mxu0 %v349_v5  ;;  %1508 = vmatpush3.msra.mxu1 %v351_v6  ;;  %v344_v10 = vld [vmem:[#allocation17 + $0x128] sm:$0xff]  ;;  %v343_v11 = vld [vmem:[#allocation17 + $0x120] sm:$0xff] }
  0x5b   : > { %298 = vst [vmem:[#allocation2] sm:$0x1] %v1821_v3  ;;  %299 = vst [vmem:[#allocation2 + $0x1] sm:$0x1] %v1821_v3  ;;  %376 = vmatprep.subr.mxu0 %v347_v7  ;;  %1509 = vmatprep.subr.mxu1 %v1821_v3  ;;  %v345_v12 = vld [vmem:[#allocation17 + $0x130] sm:$0xff]  ;;  %v340_v14 = vld [vmem:[#allocation17 + $0x108] sm:$0xff] }
  0x5c   : > { %300 = vst [vmem:[#allocation2 + $0x2] sm:$0x1] %v1821_v3  ;;  %301 = vst [vmem:[#allocation2 + $0x3] sm:$0x1] %v1821_v3  ;;  %377 = vmatpush1.msra.mxu0 %v346_v8  ;;  %1510 = vmatpush3.msra.mxu1 %v348_v9  ;;  %v341_v13 = vld [vmem:[#allocation17 + $0x110] sm:$0xff]  ;;  %v342_v15 = vld [vmem:[#allocation17 + $0x118] sm:$0xff] }
  0x5d   : > { %302 = vst [vmem:[#allocation2 + $0x4] sm:$0x1] %v1821_v3  ;;  %303 = vst [vmem:[#allocation2 + $0x5] sm:$0x1] %v1821_v3  ;;  %378 = vmatprep.subr.mxu0 %v344_v10  ;;  %1511 = vmatprep.subr.mxu1 %v1821_v3  ;;  %v338_v16 = vld [vmem:[#allocation17 + $0xf8] sm:$0xff]  ;;  %v337_v17 = vld [vmem:[#allocation17 + $0xf0] sm:$0xff] }
  0x5e   : > { %304 = vst [vmem:[#allocation2 + $0x6] sm:$0x1] %v1821_v3  ;;  %305 = vst [vmem:[#allocation2 + $0x7] sm:$0x1] %v1821_v3  ;;  %379 = vmatpush1.msra.mxu0 %v343_v11  ;;  %1512 = vmatpush3.msra.mxu1 %v345_v12  ;;  %v339_v18 = vld [vmem:[#allocation17 + $0x100] sm:$0xff]  ;;  %v334_v20 = vld [vmem:[#allocation17 + $0xd8] sm:$0xff] }
  0x5f   : > { %380 = vmatprep.subr.mxu0 %v341_v13  ;;  %1513 = vmatprep.subr.mxu1 %v1821_v3  ;;  %v335_v19 = vld [vmem:[#allocation17 + $0xe0] sm:$0xff]  ;;  %v336_v21 = vld [vmem:[#allocation17 + $0xe8] sm:$0xff]  ;;  %v333_v24 = vld [vmem:[#allocation17 + $0xd0] sm:$0xff]  ;;  %v358_v51 = vshrl.u32 %v357_v50, 7  ;;  %v1823_v54 = vmov 1966171168  }
  0x60   : > { %381 = vmatpush1.msra.mxu0 %v340_v14  ;;  %1514 = vmatpush3.msra.mxu1 %v342_v15  ;;  %v332_v22 = vld [vmem:[#allocation17 + $0xc8] sm:$0xff]  ;;  %v331_v23 = vld [vmem:[#allocation17 + $0xc0] sm:$0xff]  ;;  %v329_v25 = vld [vmem:[#allocation17 + $0xb0] sm:$0xff]  ;;  %v518_v55 = vunpack.c.l.s4 %v1823_v54  ;;  %vm2004_vm1 = vcmp.lt.s32.totalorder %v357_v50, 384 }
  0x61   : > { %382 = vmatprep.subr.mxu0 %v338_v16  ;;  %1515 = vmatprep.subr.mxu1 %v1821_v3  ;;  %v328_v26 = vld [vmem:[#allocation17 + $0xa8] sm:$0xff]  ;;  %v330_v27 = vld [vmem:[#allocation17 + $0xb8] sm:$0xff]  ;;  %v325_v29 = vld [vmem:[#allocation17 + $0x90] sm:$0xff]  ;;  %v367_v52 = vsub.s32 2, %v358_v51  ;;  %v359_v53 = vsub.s32 0, %v358_v51  ;;  %v363_v56 = vsub.s32 1, %v358_v51 }
  0x62   : > { %383 = vmatpush1.msra.mxu0 %v337_v17  ;;  %1516 = vmatpush3.msra.mxu1 %v339_v18  ;;  %v326_v28 = vld [vmem:[#allocation17 + $0x98] sm:$0xff]  ;;  %v327_v30 = vld [vmem:[#allocation17 + $0xa0] sm:$0xff]  ;;  %v324_v33 = vld [vmem:[#allocation17 + $0x88] sm:$0xff]  ;;  %v519_v60 = vunpack.c.0.s8 %v518_v55 }
  0x63   : > { %384 = vmatprep.subr.mxu0 %v335_v19  ;;  %1517 = vmatprep.subr.mxu1 %v1821_v3  ;;  %v323_v31 = vld [vmem:[#allocation17 + $0x80] sm:$0xff]  ;;  %v322_v32 = vld [vmem:[#allocation17 + $0x78] sm:$0xff]  ;;  %v320_v34 = vld [vmem:[#allocation17 + $0x68] sm:$0xff] }
  0x64   : > { %385 = vmatpush1.msra.mxu0 %v334_v20  ;;  %1518 = vmatpush3.msra.mxu1 %v336_v21  ;;  %v319_v35 = vld [vmem:[#allocation17 + $0x60] sm:$0xff]  ;;  %v321_v36 = vld [vmem:[#allocation17 + $0x70] sm:$0xff]  ;;  %v316_v38 = vld [vmem:[#allocation17 + $0x48] sm:$0xff]  ;;  %v522_v4 = vsub.s32 %v519_v60, %v358_v51 }
  0x65   : > { %386 = vmatprep.subr.mxu0 %v332_v22  ;;  %1519 = vmatprep.subr.mxu1 %v1821_v3  ;;  %v317_v37 = vld [vmem:[#allocation17 + $0x50] sm:$0xff]  ;;  %v318_v39 = vld [vmem:[#allocation17 + $0x58] sm:$0xff]  ;;  %v315_v42 = vld [vmem:[#allocation17 + $0x40] sm:$0xff] }
  0x66   : > { %387 = vmatpush1.msra.mxu0 %v331_v23  ;;  %1520 = vmatpush3.msra.mxu1 %v333_v24  ;;  %v314_v40 = vld [vmem:[#allocation17 + $0x38] sm:$0xff]  ;;  %v313_v41 = vld [vmem:[#allocation17 + $0x30] sm:$0xff]  ;;  %v311_v43 = vld [vmem:[#allocation17 + $0x20] sm:$0xff] }
  0x67   : > { %388 = vmatprep.subr.mxu0 %v329_v25  ;;  %1521 = vmatprep.subr.mxu1 %v1821_v3  ;;  %v310_v44 = vld [vmem:[#allocation17 + $0x18] sm:$0xff]  ;;  %v312_v45 = vld [vmem:[#allocation17 + $0x28] sm:$0xff]  ;;  %v307_v47 = vld [vmem:[#allocation17] sm:$0xff] }
  0x68   : > { %389 = vmatpush1.msra.mxu0 %v328_v26  ;;  %1522 = vmatpush3.msra.mxu1 %v330_v27  ;;  %v308_v46 = vld [vmem:[#allocation17 + $0x8] sm:$0xff]  ;;  %v309_v48 = vld [vmem:[#allocation17 + $0x10] sm:$0xff] }
  0x69   : > { %390 = vmatprep.subr.mxu0 %v326_v28  ;;  %1523 = vmatprep.subr.mxu1 %v1821_v3  ;;  %v306_v49 = vld [vmem:[#allocation12] sm:$0xff] }
  0x6a   : > { %391 = vmatpush1.msra.mxu0 %v325_v29  ;;  %1524 = vmatpush3.msra.mxu1 %v327_v30  ;;  %v355_v57 = vld [vmem:[%s2267_s7] sm:$0x7] }
  0x6b   : > { %392 = vmatprep.subr.mxu0 %v323_v31  ;;  %1525 = vmatprep.subr.mxu1 %v1821_v3  ;;  %v368_v58 = vrot.slane %v355_v57, %v367_v52  ;;  %v360_v59 = vrot.slane %v355_v57, %v359_v53  ;;  %v364_v61 = vrot.slane %v355_v57, %v363_v56 }
  0x6c   : > { %393 = vmatpush1.msra.mxu0 %v322_v32  ;;  %1526 = vmatpush3.msra.mxu1 %v324_v33 }
  0x6d   : > { %394 = vmatprep.subr.mxu0 %v320_v34  ;;  %1527 = vmatprep.subr.mxu1 %v1821_v3 }
  0x6e   : > { %395 = vmatpush1.msra.mxu0 %v319_v35  ;;  %1528 = vmatpush3.msra.mxu1 %v321_v36 }
  0x6f   : > { %396 = vmatprep.subr.mxu0 %v317_v37  ;;  %1529 = vmatprep.subr.mxu1 %v1821_v3 }
  0x70   : > { %397 = vmatpush1.msra.mxu0 %v316_v38  ;;  %1530 = vmatpush3.msra.mxu1 %v318_v39 }
  0x71   : > { %398 = vmatprep.subr.mxu0 %v314_v40  ;;  %1531 = vmatprep.subr.mxu1 %v1821_v3 }
  0x72   : > { %399 = vmatpush1.msra.mxu0 %v313_v41  ;;  %1532 = vmatpush3.msra.mxu1 %v315_v42 }
  0x73   : > { %400 = vmatprep.subr.mxu0 %v311_v43  ;;  %1533 = vmatprep.subr.mxu1 %v1821_v3 }
  0x74   : > { %401 = vmatpush1.msra.mxu0 %v310_v44  ;;  %1534 = vmatpush3.msra.mxu1 %v312_v45 }
  0x75   : > { %402 = vmatprep.subr.mxu0 %v308_v46  ;;  %1535 = vmatprep.subr.mxu1 %v1821_v3 }
  0x76   : > { %403 = vmatpush1.msra.mxu0 %v307_v47  ;;  %436 = vmatprep.mubr.f32.mxu0 %v1821_v3 }
  0x77   : > { %1536 = vmatpush3.msra.mxu1 %v309_v48  ;;  %1537 = vmatprep.mubr.msk.f32.mxu1 %vm1822_vm0, %v1821_v3 }
  0x78   : > { %437 = vmatmul.mubr.f32.vlgmr.msra.gmra.mxu0 %v306_v49  ;;  %1538 = vmatmul.mubr.f32.vlgmr.msra.gmra.mxu1 %v306_v49 }
 0x138   : > { %v438_v62 = vpop.f32.mrf.mxu0  ;;  %v509_v63 = vpop.f32.mrf.mxu1 }
 0x139   : > { %v510_v0 = vadd.f32 %v509_v63, %v368_v58  ;;  %v439_v3 = vadd.f32 %v438_v62, %v360_v59 }
 0x13a   : > { %v440_v1 = vpop.f32.mrf.mxu0  ;;  %v1539_v2 = vpop.f32.mrf.mxu1 }
 0x13b   : > { %v565_v5 = vcombine.high %v510_v0, %v510_v0  ;;  %v441_v6 = vadd.f32 %v440_v1, %v364_v61  ;;  %v530_v10 = vrot.slane %v510_v0, %v522_v4 }
 0x13d   : > { %v579_v7 = vrot.slane %v565_v5, %v522_v4  ;;  %v516_v8 = vcombine.low %v439_v3, %v441_v6  ;;  %v564_v9 = vcombine.high %v439_v3, %v441_v6 }
 0x13f   : > { %v523_v11 = vrot.slane %v516_v8, %v522_v4  ;;  %v572_v12 = vrot.slane %v564_v9, %v522_v4 }
 0x141   : > { %v531_v13 = vcombine.low %v523_v11, %v530_v10  ;;  %v545_v14 = vcombine.high %v523_v11, %v530_v10  ;;  %v580_v15 = vcombine.low %v572_v12, %v579_v7  ;;  %v591_v16 = vcombine.high %v572_v12, %v579_v7 }
 0x143   : > { %v538_v18 = vrot.slane %v531_v13, %v522_v4  ;;  %v552_v19 = vrot.slane %v545_v14, %v522_v4  ;;  %v587_v20 = vrot.slane %v580_v15, %v522_v4  ;;  %v598_v21 = vrot.slane %v591_v16, %v522_v4 }
 0x145   : > { %544 = vst.msk [vmem:[#allocation3] sm:$0x7] %vm2004_vm1, %v538_v18  ;;  %555 = vst.msk [vmem:[#allocation3 + $0x3] sm:$0x7] %vm2004_vm1, %v552_v19  ;;  %v556_v22 = vcombine.high %v538_v18, %v538_v18  ;;  %v560_v23 = vcombine.high %v552_v19, %v552_v19  ;;  %v602_v24 = vcombine.high %v587_v20, %v587_v20 }
 0x146   : > { %590 = vst.msk [vmem:[#allocation3 + $0xc] sm:$0x7] %vm2004_vm1, %v587_v20  ;;  %601 = vst.msk [vmem:[#allocation3 + $0xf] sm:$0x7] %vm2004_vm1, %v598_v21  ;;  %v606_v25 = vcombine.high %v598_v21, %v598_v21 }
 0x147   : > { %559 = vst.msk [vmem:[#allocation3 + $0x6] sm:$0x7] %vm2004_vm1, %v556_v22  ;;  %563 = vst.msk [vmem:[#allocation3 + $0x9] sm:$0x7] %vm2004_vm1, %v560_v23 }
 0x148   : > { %605 = vst.msk [vmem:[#allocation3 + $0x12] sm:$0x7] %vm2004_vm1, %v602_v24  ;;  %609 = vst.msk [vmem:[#allocation3 + $0x15] sm:$0x7] %vm2004_vm1, %v606_v25 }
 0x149 PF: > { %v891_v26 = vld [vmem:[#allocation18 + $0x260] sm:$0xff]  ;;  %v890_v27 = vld [vmem:[#allocation18 + $0x258] sm:$0xff]  ;;  %v885_v29 = vld [vmem:[#allocation18 + $0x230] sm:$0xff]  ;;  %s2025_s25 = sshll.u32 %s1892_s2, 7  ;;  %p1581_p3 = scmp.eq.s32.totalorder %s1892_s2, 2 }
 0x14a   : > { %v886_v28 = vld [vmem:[#allocation18 + $0x238] sm:$0xff]  ;;  %975 = vmatprep.subr.mxu0 %v891_v26  ;;  %v881_v30 = vld [vmem:[#allocation18 + $0x210] sm:$0xff]  ;;  %v880_v31 = vld [vmem:[#allocation18 + $0x208] sm:$0xff]  ;;  %s2028_s26 = sadd.s32 1, %s2025_s25  ;;  %s2031_s27 = sadd.s32 2, %s2025_s25 }
 0x14b   : > { %976 = vmatpush1.msra.mxu0 %v890_v27  ;;  %v876_v32 = vld [vmem:[#allocation18 + $0x1e8] sm:$0xff]  ;;  %v875_v33 = vld [vmem:[#allocation18 + $0x1e0] sm:$0xff]  ;;  %v893_v34 = vld [vmem:[#allocation18 + $0x270] sm:$0xff]  ;;  %s2034_s28 = sld [smem:[#allocation11 + %s2025_s25]]  ;;  %s2037_s29 = sadd.s32 3, %s2025_s25 }
 0x14c   : > { %977 = vmatprep.subr.mxu0 %v886_v28  ;;  %v871_v35 = vld [vmem:[#allocation18 + $0x1c0] sm:$0xff]  ;;  %1046 = vmatprep.subr.mxu1 %v893_v34  ;;  %v892_v36 = vld [vmem:[#allocation18 + $0x268] sm:$0xff]  ;;  %v870_v37 = vld [vmem:[#allocation18 + $0x1b8] sm:$0xff]  ;;  %s2040_s30 = sld [smem:[#allocation11 + %s2028_s26]]  ;;  %s2046_s11 = sadd.s32 4, %s2025_s25 }
 0x14d   : > { %978 = vmatpush1.msra.mxu0 %v885_v29  ;;  %1047 = vmatpush1.msra.mxu1 %v892_v36  ;;  %v888_v38 = vld [vmem:[#allocation18 + $0x248] sm:$0xff]  ;;  %v887_v39 = vld [vmem:[#allocation18 + $0x240] sm:$0xff]  ;;  %v866_v40 = vld [vmem:[#allocation18 + $0x198] sm:$0xff]  ;;  %s2043_s10 = sld [smem:[#allocation11 + %s2031_s27]]  ;;  %s2052_s13 = sadd.s32 5, %s2025_s25 }
 0x14e   : > { %979 = vmatprep.subr.mxu0 %v881_v30  ;;  %1048 = vmatprep.subr.mxu1 %v888_v38  ;;  %v883_v41 = vld [vmem:[#allocation18 + $0x220] sm:$0xff]  ;;  %v865_v42 = vld [vmem:[#allocation18 + $0x190] sm:$0xff]  ;;  %v882_v43 = vld [vmem:[#allocation18 + $0x218] sm:$0xff]  ;;  %s2049_s12 = sld [smem:[#allocation11 + %s2037_s29]]  ;;  %s2055_s14 = sadd.s32 6, %s2025_s25 }
 0x14f   : > { %980 = vmatpush1.msra.mxu0 %v880_v31  ;;  %1049 = vmatpush1.msra.mxu1 %v887_v39  ;;  %v878_v44 = vld [vmem:[#allocation18 + $0x1f8] sm:$0xff]  ;;  %v861_v45 = vld [vmem:[#allocation18 + $0x170] sm:$0xff]  ;;  %v860_v47 = vld [vmem:[#allocation18 + $0x168] sm:$0xff]  ;;  %s2058_s15 = sld [smem:[#allocation11 + %s2046_s11]]  ;;  %s2061_s16 = sadd.s32 7, %s2025_s25 }
 0x150   : > { %981 = vmatprep.subr.mxu0 %v876_v32  ;;  %1050 = vmatprep.subr.mxu1 %v883_v41  ;;  %v877_v46 = vld [vmem:[#allocation18 + $0x1f0] sm:$0xff]  ;;  %v856_v49 = vld [vmem:[#allocation18 + $0x148] sm:$0xff]  ;;  %v855_v51 = vld [vmem:[#allocation18 + $0x140] sm:$0xff]  ;;  %s2064_s17 = sld [smem:[#allocation11 + %s2052_s13]] }
 0x151   : > { %982 = vmatpush1.msra.mxu0 %v875_v33  ;;  %1051 = vmatpush1.msra.mxu1 %v882_v43  ;;  %v873_v48 = vld [vmem:[#allocation18 + $0x1d0] sm:$0xff]  ;;  %v872_v50 = vld [vmem:[#allocation18 + $0x1c8] sm:$0xff]  ;;  %v851_v53 = vld [vmem:[#allocation18 + $0x120] sm:$0xff]  ;;  %s2067_s0 = sld [smem:[#allocation11 + %s2055_s14]]  ;;  %s617_s24 = scalar_lea.vmem [#allocation20], %s2034_s28 }
 0x152   : > { %983 = vmatprep.subr.mxu0 %v871_v35  ;;  %1052 = vmatprep.subr.mxu1 %v878_v44  ;;  %v868_v52 = vld [vmem:[#allocation18 + $0x1a8] sm:$0xff]  ;;  %v867_v54 = vld [vmem:[#allocation18 + $0x1a0] sm:$0xff]  ;;  %v850_v55 = vld [vmem:[#allocation18 + $0x118] sm:$0xff]  ;;  %s2070_s1 = sld [smem:[#allocation11 + %s2061_s16]]  ;;  %s623_s19 = scalar_lea.vmem [#allocation2], %s2034_s28 }
 0x153   : > { %984 = vmatpush1.msra.mxu0 %v870_v37  ;;  %1053 = vmatpush1.msra.mxu1 %v877_v46  ;;  %v863_v56 = vld [vmem:[#allocation18 + $0x180] sm:$0xff]  ;;  %v846_v57 = vld [vmem:[#allocation18 + $0xf8] sm:$0xff]  ;;  %v845_v59 = vld [vmem:[#allocation18 + $0xf0] sm:$0xff]  ;;  %s2073_s20 = sld [smem:[#allocation10 + %s2025_s25]]  ;;  %s645_s22 = scalar_lea.vmem [#allocation20], %s2040_s30 }
 0x154   : > { %985 = vmatprep.subr.mxu0 %v866_v40  ;;  %1054 = vmatprep.subr.mxu1 %v873_v48  ;;  %v862_v58 = vld [vmem:[#allocation18 + $0x178] sm:$0xff]  ;;  %v841_v61 = vld [vmem:[#allocation18 + $0xd0] sm:$0xff]  ;;  %v840_v63 = vld [vmem:[#allocation18 + $0xc8] sm:$0xff]  ;;  %s2076_s21 = sld [smem:[#allocation10 + %s2028_s26]]  ;;  %s651_s3 = scalar_lea.vmem [#allocation2], %s2040_s30 }
 0x155   : > { %986 = vmatpush1.msra.mxu0 %v865_v42  ;;  %1055 = vmatpush1.msra.mxu1 %v872_v50  ;;  %v858_v60 = vld [vmem:[#allocation18 + $0x158] sm:$0xff]  ;;  %v857_v62 = vld [vmem:[#allocation18 + $0x150] sm:$0xff]  ;;  %v836_v1 = vld [vmem:[#allocation18 + $0xa8] sm:$0xff]  ;;  %s2079_s23 = sld [smem:[#allocation10 + %s2031_s27]]  ;;  %s670_s4 = scalar_lea.vmem [#allocation20], %s2043_s10 }
 0x156   : > { %987 = vmatprep.subr.mxu0 %v861_v45  ;;  %1056 = vmatprep.subr.mxu1 %v868_v52  ;;  %v853_v0 = vld [vmem:[#allocation18 + $0x130] sm:$0xff]  ;;  %v852_v2 = vld [vmem:[#allocation18 + $0x128] sm:$0xff]  ;;  %v835_v3 = vld [vmem:[#allocation18 + $0xa0] sm:$0xff]  ;;  %s676_s5 = scalar_lea.vmem [#allocation2], %s2043_s10  ;;  %s695_s28 = scalar_lea.vmem [#allocation20], %s2049_s12 }
 0x157   : > { %988 = vmatpush1.msra.mxu0 %v860_v47  ;;  %1057 = vmatpush1.msra.mxu1 %v867_v54  ;;  %v848_v4 = vld [vmem:[#allocation18 + $0x108] sm:$0xff]  ;;  %v831_v5 = vld [vmem:[#allocation18 + $0x80] sm:$0xff]  ;;  %v830_v7 = vld [vmem:[#allocation18 + $0x78] sm:$0xff]  ;;  %s720_s30 = scalar_lea.vmem [#allocation20], %s2058_s15  ;;  %s770_s10 = scalar_lea.vmem [#allocation20], %s2067_s0 }
 0x158   : > { %989 = vmatprep.subr.mxu0 %v856_v49  ;;  %1058 = vmatprep.subr.mxu1 %v863_v56  ;;  %v847_v6 = vld [vmem:[#allocation18 + $0x100] sm:$0xff]  ;;  %v826_v9 = vld [vmem:[#allocation18 + $0x58] sm:$0xff]  ;;  %v825_v11 = vld [vmem:[#allocation18 + $0x50] sm:$0xff] }
 0x159   : > { %990 = vmatpush1.msra.mxu0 %v855_v51  ;;  %1059 = vmatpush1.msra.mxu1 %v862_v58  ;;  %v843_v8 = vld [vmem:[#allocation18 + $0xe0] sm:$0xff]  ;;  %v842_v10 = vld [vmem:[#allocation18 + $0xd8] sm:$0xff]  ;;  %v821_v13 = vld [vmem:[#allocation18 + $0x30] sm:$0xff] }
 0x15a   : > { %991 = vmatprep.subr.mxu0 %v851_v53  ;;  %1060 = vmatprep.subr.mxu1 %v858_v60  ;;  %v838_v12 = vld [vmem:[#allocation18 + $0xb8] sm:$0xff]  ;;  %v837_v14 = vld [vmem:[#allocation18 + $0xb0] sm:$0xff]  ;;  %v820_v15 = vld [vmem:[#allocation18 + $0x28] sm:$0xff] }
 0x15b   : > { %992 = vmatpush1.msra.mxu0 %v850_v55  ;;  %1061 = vmatpush1.msra.mxu1 %v857_v62  ;;  %v833_v16 = vld [vmem:[#allocation18 + $0x90] sm:$0xff]  ;;  %v816_v17 = vld [vmem:[#allocation18 + $0x8] sm:$0xff]  ;;  %v815_v19 = vld [vmem:[#allocation18] sm:$0xff] }
 0x15c   : > { %993 = vmatprep.subr.mxu0 %v846_v57  ;;  %1062 = vmatprep.subr.mxu1 %v853_v0  ;;  %v832_v18 = vld [vmem:[#allocation18 + $0x88] sm:$0xff]  ;;  %v971_v21 = vld [vmem:[#allocation18 + $0x4e0] sm:$0xff]  ;;  %v970_v23 = vld [vmem:[#allocation18 + $0x4d8] sm:$0xff] }
 0x15d   : > { %994 = vmatpush1.msra.mxu0 %v845_v59  ;;  %1063 = vmatpush1.msra.mxu1 %v852_v2  ;;  %v828_v20 = vld [vmem:[#allocation18 + $0x68] sm:$0xff]  ;;  %v827_v22 = vld [vmem:[#allocation18 + $0x60] sm:$0xff]  ;;  %v966_v25 = vld [vmem:[#allocation18 + $0x4b8] sm:$0xff] }
 0x15e   : > { %995 = vmatprep.subr.mxu0 %v841_v61  ;;  %1064 = vmatprep.subr.mxu1 %v848_v4  ;;  %v823_v24 = vld [vmem:[#allocation18 + $0x40] sm:$0xff]  ;;  %v822_v26 = vld [vmem:[#allocation18 + $0x38] sm:$0xff]  ;;  %v965_v27 = vld [vmem:[#allocation18 + $0x4b0] sm:$0xff] }
 0x15f   : > { %996 = vmatpush1.msra.mxu0 %v840_v63  ;;  %1065 = vmatpush1.msra.mxu1 %v847_v6  ;;  %v818_v28 = vld [vmem:[#allocation18 + $0x18] sm:$0xff]  ;;  %v961_v29 = vld [vmem:[#allocation18 + $0x490] sm:$0xff]  ;;  %v960_v30 = vld [vmem:[#allocation18 + $0x488] sm:$0xff] }
 0x160   : > { %997 = vmatprep.subr.mxu0 %v836_v1  ;;  %1066 = vmatprep.subr.mxu1 %v843_v8  ;;  %v817_v31 = vld [vmem:[#allocation18 + $0x10] sm:$0xff]  ;;  %v956_v32 = vld [vmem:[#allocation18 + $0x468] sm:$0xff]  ;;  %v955_v33 = vld [vmem:[#allocation18 + $0x460] sm:$0xff] }
 0x161   : > { %998 = vmatpush1.msra.mxu0 %v835_v3  ;;  %1067 = vmatpush1.msra.mxu1 %v842_v10  ;;  %v973_v34 = vld [vmem:[#allocation18 + $0x4f0] sm:$0xff]  ;;  %v951_v35 = vld [vmem:[#allocation18 + $0x440] sm:$0xff]  ;;  %v972_v36 = vld [vmem:[#allocation18 + $0x4e8] sm:$0xff] }
 0x162   : > { %999 = vmatprep.subr.mxu0 %v831_v5  ;;  %1068 = vmatprep.subr.mxu1 %v838_v12  ;;  %v968_v37 = vld [vmem:[#allocation18 + $0x4c8] sm:$0xff]  ;;  %v967_v38 = vld [vmem:[#allocation18 + $0x4c0] sm:$0xff]  ;;  %v950_v39 = vld [vmem:[#allocation18 + $0x438] sm:$0xff] }
 0x163   : > { %1000 = vmatpush1.msra.mxu0 %v830_v7  ;;  %1069 = vmatpush1.msra.mxu1 %v837_v14  ;;  %v963_v40 = vld [vmem:[#allocation18 + $0x4a0] sm:$0xff]  ;;  %v618_v41 = vld [vmem:[%s617_s24] sm:$0x1]  ;;  %v946_v44 = vld [vmem:[#allocation18 + $0x418] sm:$0xff]  ;;  %s701_s24 = scalar_lea.vmem [#allocation2], %s2049_s12  ;;  %s776_s12 = scalar_lea.vmem [#allocation2], %s2067_s0 }
 0x164   : > { %1001 = vmatprep.subr.mxu0 %v826_v9  ;;  %1070 = vmatprep.subr.mxu1 %v833_v16  ;;  %v624_v42 = vld [vmem:[%s623_s19] sm:$0x1]  ;;  %v962_v45 = vld [vmem:[#allocation18 + $0x498] sm:$0xff]  ;;  %619 = vst [vmem:[#allocation4 + $0x8] sm:$0x1] %v618_v41  ;;  %v940_v59 = vld [vmem:[#allocation18 + $0x3e8] sm:$0xff] }
 0x165   : > { %1002 = vmatpush1.msra.mxu0 %v825_v11  ;;  %1071 = vmatpush1.msra.mxu1 %v832_v18  ;;  %v646_v43 = vld [vmem:[%s645_s22] sm:$0x1]  ;;  %625 = vst [vmem:[#allocation5 + $0x8] sm:$0x1] %v624_v42  ;;  %v958_v50 = vld [vmem:[#allocation18 + $0x478] sm:$0xff]  ;;  %s795_s19 = scalar_lea.vmem [#allocation20], %s2070_s1 }
 0x166   : > { %1003 = vmatprep.subr.mxu0 %v821_v13  ;;  %1072 = vmatprep.subr.mxu1 %v828_v20  ;;  %647 = vst [vmem:[#allocation4 + $0x9] sm:$0x1] %v646_v43  ;;  %v652_v46 = vld [vmem:[%s651_s3] sm:$0x1]  ;;  %s726_s3 = scalar_lea.vmem [#allocation2], %s2058_s15  ;;  %s801_s15 = scalar_lea.vmem [#allocation2], %s2070_s1 }
 0x167   : > { %1004 = vmatpush1.msra.mxu0 %v820_v15  ;;  %1073 = vmatpush1.msra.mxu1 %v827_v22  ;;  %v671_v47 = vld [vmem:[%s670_s4] sm:$0x1]  ;;  %653 = vst [vmem:[#allocation5 + $0x9] sm:$0x1] %v652_v46  ;;  %s745_s4 = scalar_lea.vmem [#allocation20], %s2064_s17  ;;  %s620_s0 = scalar_lea.vmem [#allocation2], %s2073_s20 }
 0x168   : > { %1005 = vmatprep.subr.mxu0 %v816_v17  ;;  %1074 = vmatprep.subr.mxu1 %v823_v24  ;;  %v677_v48 = vld [vmem:[%s676_s5] sm:$0x1]  ;;  %672 = vst [vmem:[#allocation4 + $0xa] sm:$0x1] %v671_v47  ;;  %s751_s5 = scalar_lea.vmem [#allocation2], %s2064_s17  ;;  %s614_s17 = scalar_lea.vmem [#allocation20], %s2073_s20 }
 0x169   : > { %1006 = vmatpush1.msra.mxu0 %v815_v19  ;;  %1075 = vmatpush1.msra.mxu1 %v822_v26  ;;  %v945_v49 = vld [vmem:[#allocation18 + $0x410] sm:$0xff]  ;;  %678 = vst [vmem:[#allocation5 + $0xa] sm:$0x1] %v677_v48  ;;  %s642_s22 = scalar_lea.vmem [#allocation20], %s2076_s21  ;;  %v936_v5 = vld [vmem:[#allocation18 + $0x3c8] sm:$0xff]  ;;  %s667_s1 = scalar_lea.vmem [#allocation20], %s2079_s23 }
 0x16a   : > { %1007 = vmatprep.subr.mxu0 %v971_v21  ;;  %1076 = vmatprep.subr.mxu1 %v818_v28  ;;  %v696_v51 = vld [vmem:[%s695_s28] sm:$0x1]  ;;  %s648_s28 = scalar_lea.vmem [#allocation2], %s2076_s21  ;;  %v952_v6 = vld [vmem:[#allocation18 + $0x448] sm:$0xff]  ;;  %v935_v8 = vld [vmem:[#allocation18 + $0x3c0] sm:$0xff]  ;;  %s673_s20 = scalar_lea.vmem [#allocation2], %s2079_s23 }
 0x16b   : > { %1008 = vmatpush2.msra.mxu0 %v970_v23  ;;  %1077 = vmatpush1.msra.mxu1 %v817_v31  ;;  %v702_v52 = vld [vmem:[%s701_s24] sm:$0x1]  ;;  %697 = vst [vmem:[#allocation4 + $0xb] sm:$0x1] %v696_v51  ;;  %s2103_s24 = sld [smem:[#allocation10 + %s2037_s29]]  ;;  %v948_v9 = vld [vmem:[#allocation18 + $0x428] sm:$0xff] }
 0x16c   : > { %1009 = vmatprep.subr.mxu0 %v966_v25  ;;  %1078 = vmatprep.subr.mxu1 %v973_v34  ;;  %v721_v53 = vld [vmem:[%s720_s30] sm:$0x1]  ;;  %703 = vst [vmem:[#allocation5 + $0xb] sm:$0x1] %v702_v52  ;;  %s2107_s21 = sld [smem:[#allocation10 + %s2046_s11]]  ;;  %v931_v11 = vld [vmem:[#allocation18 + $0x3a0] sm:$0xff] }
 0x16d   : > { %1010 = vmatpush2.msra.mxu0 %v965_v27  ;;  %1079 = vmatpush2.msra.mxu1 %v972_v36  ;;  %v941_v54 = vld [vmem:[#allocation18 + $0x3f0] sm:$0xff]  ;;  %722 = vst [vmem:[#allocation4 + $0xc] sm:$0x1] %v721_v53  ;;  %v947_v12 = vld [vmem:[#allocation18 + $0x420] sm:$0xff]  ;;  %s2110_s30 = sld [smem:[#allocation10 + %s2052_s13]]  ;;  %v930_v13 = vld [vmem:[#allocation18 + $0x398] sm:$0xff] }
 0x16e   : > { %1011 = vmatprep.subr.mxu0 %v961_v29  ;;  %1080 = vmatprep.subr.mxu1 %v968_v37  ;;  %v957_v55 = vld [vmem:[#allocation18 + $0x470] sm:$0xff]  ;;  %v943_v14 = vld [vmem:[#allocation18 + $0x400] sm:$0xff]  ;;  %v926_v15 = vld [vmem:[#allocation18 + $0x378] sm:$0xff]  ;;  %s2116_s23 = sld [smem:[#allocation10 + %s2061_s16]] }
 0x16f   : > { %1012 = vmatpush2.msra.mxu0 %v960_v30  ;;  %v727_v56 = vld [vmem:[%s726_s3] sm:$0x1]  ;;  %1081 = vmatpush2.msra.mxu1 %v967_v38  ;;  %s2113_s3 = sld [smem:[#allocation10 + %s2055_s14]]  ;;  %v942_v17 = vld [vmem:[#allocation18 + $0x3f8] sm:$0xff]  ;;  %v920_v19 = vld [vmem:[#allocation18 + $0x348] sm:$0xff] }
 0x170   : > { %1013 = vmatprep.subr.mxu0 %v956_v32  ;;  %v746_v57 = vld [vmem:[%s745_s4] sm:$0x1]  ;;  %728 = vst [vmem:[#allocation5 + $0xc] sm:$0x1] %v727_v56  ;;  %1082 = vmatprep.subr.mxu1 %v963_v40  ;;  %v938_v20 = vld [vmem:[#allocation18 + $0x3d8] sm:$0xff]  ;;  %s2119_s4 = sld [smem:[#allocation9 + %s2025_s25]] }
 0x171   : > { %1014 = vmatpush2.msra.mxu0 %v955_v33  ;;  %v752_v58 = vld [vmem:[%s751_s5] sm:$0x1]  ;;  %747 = vst [vmem:[#allocation4 + $0xd] sm:$0x1] %v746_v57  ;;  %1083 = vmatpush2.msra.mxu1 %v962_v45  ;;  %v916_v21 = vld [vmem:[#allocation18 + $0x328] sm:$0xff]  ;;  %v915_v25 = vld [vmem:[#allocation18 + $0x320] sm:$0xff] }
 0x172   : > { %1015 = vmatprep.subr.mxu0 %v951_v35  ;;  %v771_v60 = vld [vmem:[%s770_s10] sm:$0x1]  ;;  %753 = vst [vmem:[#allocation5 + $0xd] sm:$0x1] %v752_v58  ;;  %1084 = vmatprep.subr.mxu1 %v958_v50  ;;  %s692_s5 = scalar_lea.vmem [#allocation20], %s2103_s24  ;;  %s698_s10 = scalar_lea.vmem [#allocation2], %s2103_s24 }
 0x173   : > { %v777_v61 = vld [vmem:[%s776_s12] sm:$0x1]  ;;  %1016 = vmatpush2.msra.mxu0 %v950_v39  ;;  %772 = vst [vmem:[#allocation4 + $0xe] sm:$0x1] %v771_v60  ;;  %1085 = vmatpush2.msra.mxu1 %v957_v55  ;;  %v932_v28 = vld [vmem:[#allocation18 + $0x3a8] sm:$0xff]  ;;  %v911_v29 = vld [vmem:[#allocation18 + $0x300] sm:$0xff]  ;;  %v629_v55 = vlaneseq }
 0x174   : > { %v796_v62 = vld [vmem:[%s795_s19] sm:$0x1]  ;;  %778 = vst [vmem:[#allocation5 + $0xe] sm:$0x1] %v777_v61  ;;  %1017 = vmatprep.subr.mxu0 %v946_v44  ;;  %s717_s12 = scalar_lea.vmem [#allocation20], %s2107_s21  ;;  %s723_s19 = scalar_lea.vmem [#allocation2], %s2107_s21 }
 0x175   : > { %v953_v63 = vld [vmem:[#allocation18 + $0x450] sm:$0xff]  ;;  %797 = vst [vmem:[#allocation4 + $0xf] sm:$0x1] %v796_v62  ;;  %1018 = vmatpush2.msra.mxu0 %v945_v49  ;;  %v928_v32 = vld [vmem:[#allocation18 + $0x388] sm:$0xff]  ;;  %v910_v33 = vld [vmem:[#allocation18 + $0x2f8] sm:$0xff]  ;;  %s2135_s24 = sld [smem:[#allocation9 + %s2028_s26]] }
 0x176   : > { %v802_v0 = vld [vmem:[%s801_s15] sm:$0x1]  ;;  %1019 = vmatprep.subr.mxu0 %v941_v54  ;;  %1086 = vmatprep.subr.mxu1 %v953_v63  ;;  %s742_s15 = scalar_lea.vmem [#allocation20], %s2110_s30  ;;  %v927_v40 = vld [vmem:[#allocation18 + $0x380] sm:$0xff]  ;;  %v906_v41 = vld [vmem:[#allocation18 + $0x2d8] sm:$0xff]  ;;  %s2139_s21 = sld [smem:[#allocation9 + %s2031_s27]] }
 0x177   : > { %v615_v1 = vld [vmem:[%s614_s17] sm:$0x1]  ;;  %803 = vst [vmem:[#allocation5 + $0xf] sm:$0x1] %v802_v0  ;;  %1020 = vmatpush2.msra.mxu0 %v940_v59  ;;  %1087 = vmatpush2.msra.mxu1 %v952_v6  ;;  %s748_s17 = scalar_lea.vmem [#allocation2], %s2110_s30  ;;  %v923_v42 = vld [vmem:[#allocation18 + $0x360] sm:$0xff] }
 0x178   : > { %616 = vst [vmem:[#allocation4] sm:$0x1] %v615_v1  ;;  %v621_v2 = vld [vmem:[%s620_s0] sm:$0x1]  ;;  %1021 = vmatprep.subr.mxu0 %v936_v5  ;;  %1088 = vmatprep.subr.mxu1 %v948_v9  ;;  %s767_s0 = scalar_lea.vmem [#allocation20], %s2113_s3  ;;  %v922_v44 = vld [vmem:[#allocation18 + $0x358] sm:$0xff] }
 0x179   : > { %v643_v3 = vld [vmem:[%s642_s22] sm:$0x1]  ;;  %622 = vst [vmem:[#allocation5] sm:$0x1] %v621_v2  ;;  %1022 = vmatpush2.msra.mxu0 %v935_v8  ;;  %1089 = vmatpush2.msra.mxu1 %v947_v12  ;;  %s773_s22 = scalar_lea.vmem [#allocation2], %s2113_s3  ;;  %v918_v46 = vld [vmem:[#allocation18 + $0x338] sm:$0xff] }
 0x17a   : > { %v649_v4 = vld [vmem:[%s648_s28] sm:$0x1]  ;;  %644 = vst [vmem:[#allocation4 + $0x1] sm:$0x1] %v643_v3  ;;  %1023 = vmatprep.subr.mxu0 %v931_v11  ;;  %1090 = vmatprep.subr.mxu1 %v943_v14  ;;  %s792_s28 = scalar_lea.vmem [#allocation20], %s2116_s23  ;;  %s2142_s30 = sld [smem:[#allocation9 + %s2037_s29]] }
 0x17b   : > { %v668_v7 = vld [vmem:[%s667_s1] sm:$0x1]  ;;  %650 = vst [vmem:[#allocation5 + $0x1] sm:$0x1] %v649_v4  ;;  %1024 = vmatpush2.msra.mxu0 %v930_v13  ;;  %1091 = vmatpush2.msra.mxu1 %v942_v17  ;;  %s798_s1 = scalar_lea.vmem [#allocation2], %s2116_s23  ;;  %v900_v47 = vld [vmem:[#allocation18 + $0x2a8] sm:$0xff] }
 0x17c   : > { %669 = vst [vmem:[#allocation4 + $0x2] sm:$0x1] %v668_v7  ;;  %v674_v10 = vld [vmem:[%s673_s20] sm:$0x1]  ;;  %v2121_v22 = vld [vmem:[#allocation4 + $0x8] sm:$0xff]  ;;  %1025 = vmatprep.subr.mxu0 %v926_v15  ;;  %1092 = vmatprep.subr.mxu1 %v938_v20  ;;  %s626_s20 = smul.u32 3, %s2119_s4 }
 0x17d   : > { %675 = vst [vmem:[#allocation5 + $0x2] sm:$0x1] %v674_v10  ;;  %v925_v16 = vld [vmem:[#allocation18 + $0x370] sm:$0xff]  ;;  %1039 = vmatprep.mubr.f32.mxu0 %v2121_v22  ;;  %s2145_s3 = sld [smem:[#allocation9 + %s2046_s11]]  ;;  %v896_v49 = vld [vmem:[#allocation18 + $0x288] sm:$0xff]  ;;  %v895_v51 = vld [vmem:[#allocation18 + $0x280] sm:$0xff]  ;;  %1110 = vmatprep.mubr.f32.mxu1 %v2121_v22 }
 0x17e   : > { %v921_v18 = vld [vmem:[#allocation18 + $0x350] sm:$0xff]  ;;  %1026 = vmatpush2.msra.mxu0 %v925_v16  ;;  %s2148_s23 = sld [smem:[#allocation9 + %s2052_s13]]  ;;  %v912_v52 = vld [vmem:[#allocation18 + $0x308] sm:$0xff]  ;;  %v974_v53 = vld [vmem:[#allocation18 + $0x4f8] sm:$0xff]  ;;  %vm2158_vm2 = vcmp.lt.s32.totalorder %v629_v55, 384 }
 0x17f   : > { %v937_v23 = vld [vmem:[#allocation18 + $0x3d0] sm:$0xff]  ;;  %1027 = vmatprep.subr.mxu0 %v921_v18  ;;  %v894_v54 = vld [vmem:[#allocation18 + $0x278] sm:$0xff]  ;;  %v908_v58 = vld [vmem:[#allocation18 + $0x2e8] sm:$0xff] }
 0x180   : > { %v933_v24 = vld [vmem:[#allocation18 + $0x3b0] sm:$0xff]  ;;  %1028 = vmatpush2.msra.mxu0 %v920_v19  ;;  %1093 = vmatpush2.msra.mxu1 %v937_v23  ;;  %v964_v60 = vld [vmem:[#allocation18 + $0x4a8] sm:$0xff]  ;;  %v907_v61 = vld [vmem:[#allocation18 + $0x2e0] sm:$0xff] }
 0x181   : > { %v693_v26 = vld [vmem:[%s692_s5] sm:$0x1]  ;;  %1029 = vmatprep.subr.mxu0 %v916_v21  ;;  %1094 = vmatprep.subr.mxu1 %v933_v24  ;;  %s2151_s5 = sld [smem:[#allocation9 + %s2055_s14]]  ;;  %v884_v63 = vld [vmem:[#allocation18 + $0x228] sm:$0xff]  ;;  %v903_v0 = vld [vmem:[#allocation18 + $0x2c0] sm:$0xff] }
 0x182   : > { %v699_v27 = vld [vmem:[%s698_s10] sm:$0x1]  ;;  %694 = vst [vmem:[#allocation4 + $0x3] sm:$0x1] %v693_v26  ;;  %1030 = vmatpush2.msra.mxu0 %v915_v25  ;;  %1095 = vmatpush2.msra.mxu1 %v932_v28  ;;  %s654_s10 = smul.u32 3, %s2135_s24  ;;  %v902_v1 = vld [vmem:[#allocation18 + $0x2b8] sm:$0xff] }
 0x183   : > { %v718_v30 = vld [vmem:[%s717_s12] sm:$0x1]  ;;  %700 = vst [vmem:[#allocation5 + $0x3] sm:$0x1] %v699_v27  ;;  %1031 = vmatprep.subr.mxu0 %v911_v29  ;;  %1096 = vmatprep.subr.mxu1 %v928_v32  ;;  %s679_s12 = smul.u32 3, %s2139_s21  ;;  %v898_v2 = vld [vmem:[#allocation18 + $0x298] sm:$0xff] }
 0x184   : > { %v724_v31 = vld [vmem:[%s723_s19] sm:$0x1]  ;;  %719 = vst [vmem:[#allocation4 + $0x4] sm:$0x1] %v718_v30  ;;  %1032 = vmatpush2.msra.mxu0 %v910_v33  ;;  %1097 = vmatpush2.msra.mxu1 %v927_v40  ;;  %s704_s19 = smul.u32 3, %s2142_s30  ;;  %v959_v9 = vld [vmem:[#allocation18 + $0x480] sm:$0xff] }
 0x185   : > { %v743_v34 = vld [vmem:[%s742_s15] sm:$0x1]  ;;  %725 = vst [vmem:[#allocation5 + $0x4] sm:$0x1] %v724_v31  ;;  %1033 = vmatprep.subr.mxu0 %v906_v41  ;;  %1098 = vmatprep.subr.mxu1 %v923_v42  ;;  %s627_s15 = scalar_lea.vmem [#allocation3], %s626_s20  ;;  %v879_v12 = vld [vmem:[#allocation18 + $0x200] sm:$0xff] }
 0x186   : > { %v749_v35 = vld [vmem:[%s748_s17] sm:$0x1]  ;;  %744 = vst [vmem:[#allocation4 + $0x5] sm:$0x1] %v743_v34  ;;  %1099 = vmatpush2.msra.mxu1 %v922_v44  ;;  %s635_s17 = scalar_lea.vmem [#allocation15], %s2119_s4  ;;  %s685_s4 = scalar_lea.vmem [#allocation15], %s2139_s21 }
 0x187   : > { %v768_v36 = vld [vmem:[%s767_s0] sm:$0x1]  ;;  %750 = vst [vmem:[#allocation5 + $0x5] sm:$0x1] %v749_v35  ;;  %1100 = vmatprep.subr.mxu1 %v918_v46  ;;  %s655_s0 = scalar_lea.vmem [#allocation3], %s654_s10  ;;  %s705_s20 = scalar_lea.vmem [#allocation3], %s704_s19 }
 0x188   : > { %v774_v37 = vld [vmem:[%s773_s22] sm:$0x1]  ;;  %769 = vst [vmem:[#allocation4 + $0x6] sm:$0x1] %v768_v36  ;;  %s660_s22 = scalar_lea.vmem [#allocation15], %s2135_s24  ;;  %s729_s24 = smul.u32 3, %s2145_s3 }
 0x189   : > { %v793_v38 = vld [vmem:[%s792_s28] sm:$0x1]  ;;  %775 = vst [vmem:[#allocation5 + $0x6] sm:$0x1] %v774_v37  ;;  %s680_s28 = scalar_lea.vmem [#allocation3], %s679_s12  ;;  %s754_s21 = smul.u32 3, %s2148_s23 }
 0x18a   : > { %v799_v39 = vld [vmem:[%s798_s1] sm:$0x1]  ;;  %794 = vst [vmem:[#allocation4 + $0x7] sm:$0x1] %v793_v38  ;;  %s710_s1 = scalar_lea.vmem [#allocation15], %s2142_s30  ;;  %v954_v14 = vld [vmem:[#allocation18 + $0x458] sm:$0xff] }
 0x18b   : > { %800 = vst [vmem:[#allocation5 + $0x7] sm:$0x1] %v799_v39  ;;  %v905_v43 = vld [vmem:[#allocation18 + $0x2d0] sm:$0xff]  ;;  %v874_v15 = vld [vmem:[#allocation18 + $0x1d8] sm:$0xff]  ;;  %s735_s10 = scalar_lea.vmem [#allocation15], %s2145_s3  ;;  %s730_s12 = scalar_lea.vmem [#allocation3], %s729_s24 }
 0x18c   : > { %v901_v45 = vld [vmem:[#allocation18 + $0x2b0] sm:$0xff]  ;;  %1034 = vmatpush2.msra.mxu0 %v905_v43  ;;  %s760_s30 = scalar_lea.vmem [#allocation15], %s2148_s23  ;;  %s779_s19 = smul.u32 3, %s2151_s5  ;;  %v944_v24 = vld [vmem:[#allocation18 + $0x408] sm:$0xff]  ;;  %v939_v27 = vld [vmem:[#allocation18 + $0x3e0] sm:$0xff]  ;;  %v1190_v46 = vshrl.u32 %v629_v55, 7 }
 0x18d   : > { %v917_v48 = vld [vmem:[#allocation18 + $0x330] sm:$0xff]  ;;  %1035 = vmatprep.subr.mxu0 %v901_v45  ;;  %s2189_s3 = sld [smem:[#allocation9 + %s2061_s16]]  ;;  %s785_s23 = scalar_lea.vmem [#allocation15], %s2151_s5  ;;  %v864_v26 = vld [vmem:[#allocation18 + $0x188] sm:$0xff]  ;;  %v859_v28 = vld [vmem:[#allocation18 + $0x160] sm:$0xff] }
 0x18e   : > { %v913_v50 = vld [vmem:[#allocation18 + $0x310] sm:$0xff]  ;;  %1036 = vmatpush2.msra.mxu0 %v900_v47  ;;  %1101 = vmatpush2.msra.mxu1 %v917_v48  ;;  %v934_v29 = vld [vmem:[#allocation18 + $0x3b8] sm:$0xff]  ;;  %v924_v34 = vld [vmem:[#allocation18 + $0x368] sm:$0xff]  ;;  %v1191_v47 = vsub.s32 0, %v1190_v46  ;;  %s2211_s24 = sld [smem:[#allocation9 + %s2028_s26]] }
 0x18f   : > { %1037 = vmatprep.subr.mxu0 %v896_v49  ;;  %v969_v57 = vld [vmem:[#allocation18 + $0x4d0] sm:$0xff]  ;;  %1102 = vmatprep.subr.mxu1 %v913_v50  ;;  %v854_v30 = vld [vmem:[#allocation18 + $0x138] sm:$0xff]  ;;  %v844_v35 = vld [vmem:[#allocation18 + $0xe8] sm:$0xff]  ;;  %v1195_v49 = vsub.s32 1, %v1190_v46  ;;  %s2226_s26 = sld [smem:[#allocation9 + %s2055_s14]] }
 0x190   : > { %1038 = vmatpush2.msra.mxu0 %v895_v51  ;;  %v889_v59 = vld [vmem:[#allocation18 + $0x250] sm:$0xff]  ;;  %1103 = vmatpush2.msra.mxu1 %v912_v52  ;;  %v919_v36 = vld [vmem:[#allocation18 + $0x340] sm:$0xff]  ;;  %v914_v38 = vld [vmem:[#allocation18 + $0x318] sm:$0xff] }
 0x191   : > { %v2154_v56 = vld [vmem:[#allocation4] sm:$0xff]  ;;  %1470 = vmatprep.subr.mxu0 %v974_v53  ;;  %1104 = vmatprep.subr.mxu1 %v908_v58  ;;  %v839_v37 = vld [vmem:[#allocation18 + $0xc0] sm:$0xff]  ;;  %v834_v39 = vld [vmem:[#allocation18 + $0x98] sm:$0xff] }
 0x192   : > { %1040 = vmatmul.mubr.f32.vlgmr.msra.gmra.mxu0 %v2154_v56  ;;  %v628_v3 = vld [vmem:[%s627_s15] sm:$0x7]  ;;  %1105 = vmatpush2.msra.mxu1 %v907_v61  ;;  %s755_s15 = scalar_lea.vmem [#allocation3], %s754_s21  ;;  %v904_v42 = vld [vmem:[#allocation18 + $0x2c8] sm:$0xff]  ;;  %v899_v44 = vld [vmem:[#allocation18 + $0x2a0] sm:$0xff]  ;;  %s2217_s21 = sld [smem:[#allocation9 + %s2037_s29]] }
 0x193   : > { %1471 = vmatpush3.msra.mxu0 %v894_v54  ;;  %v636_v4 = vld [vmem:[%s635_s17] sm:$0x1]  ;;  %633 = vst.msk [vmem:[#allocation6] ss:$8 sm:$0x7] %vm2158_vm2, %v628_v3  ;;  %1106 = vmatprep.subr.mxu1 %v903_v0  ;;  %s780_s17 = scalar_lea.vmem [#allocation3], %s779_s19 }
 0x194   : > { %v656_v5 = vld [vmem:[%s655_s0] sm:$0x7]  ;;  %1472 = vmatprep.subr.mxu0 %v969_v57  ;;  %637 = vst [vmem:[#allocation7] sm:$0x1] %v636_v4  ;;  %1107 = vmatpush2.msra.mxu1 %v902_v1  ;;  %s804_s5 = smul.u32 3, %s2189_s3  ;;  %s810_s0 = scalar_lea.vmem [#allocation15], %s2189_s3 }
 0x195   : > { %658 = vst.msk [vmem:[#allocation6 + $0x1] ss:$8 sm:$0x7] %vm2158_vm2, %v656_v5  ;;  %v661_v6 = vld [vmem:[%s660_s22] sm:$0x1]  ;;  %1473 = vmatpush3.msra.mxu0 %v889_v59  ;;  %1108 = vmatprep.subr.mxu1 %v898_v2  ;;  %v824_v43 = vld [vmem:[#allocation18 + $0x48] sm:$0xff] }
 0x196   : > { %v681_v7 = vld [vmem:[%s680_s28] sm:$0x7]  ;;  %662 = vst [vmem:[#allocation7 + $0x1] sm:$0x1] %v661_v6  ;;  %1474 = vmatprep.subr.mxu0 %v964_v60  ;;  %1181 = vmatprep.mubr.f32.mxu0 %v2121_v22  ;;  %s805_s22 = scalar_lea.vmem [#allocation3], %s804_s5  ;;  %v819_v45 = vld [vmem:[#allocation18 + $0x20] sm:$0xff] }
 0x197   : > { %v686_v8 = vld [vmem:[%s685_s4] sm:$0x1]  ;;  %683 = vst.msk [vmem:[#allocation6 + $0x2] ss:$8 sm:$0x7] %vm2158_vm2, %v681_v7  ;;  %1475 = vmatpush3.msra.mxu0 %v884_v63  ;;  %s1249_s3 = scalar_lea.vmem [#allocation20], %s2211_s24 }
 0x198   : > { %v897_v10 = vld [vmem:[#allocation18 + $0x290] sm:$0xff]  ;;  %687 = vst [vmem:[#allocation7 + $0x2] sm:$0x1] %v686_v8  ;;  %1476 = vmatprep.subr.mxu0 %v959_v9  ;;  %s1261_s14 = scalar_lea.vmem [#allocation2], %s2217_s21  ;;  %s1274_s4 = scalar_lea.vmem [#allocation20], %s2226_s26 }
 0x199   : > { %v711_v11 = vld [vmem:[%s710_s1] sm:$0x1]  ;;  %1109 = vmatpush2.msra.mxu1 %v897_v10  ;;  %1477 = vmatpush3.msra.mxu0 %v879_v12  ;;  %s2208_s1 = sld [smem:[#allocation9 + %s2025_s25]] }
 0x19a   : > { %v706_v13 = vld [vmem:[%s705_s20] sm:$0x7]  ;;  %712 = vst [vmem:[#allocation7 + $0x3] sm:$0x1] %v711_v11  ;;  %1478 = vmatprep.subr.mxu0 %v954_v14  ;;  %1111 = vmatmul.mubr.f32.vlgmr.msra.gmra.mxu1 %v2154_v56  ;;  %s2214_s20 = sld [smem:[#allocation9 + %s2031_s27]] }
 0x19b   : > { %708 = vst.msk [vmem:[#allocation6 + $0x3] ss:$8 sm:$0x7] %vm2158_vm2, %v706_v13  ;;  %v736_v16 = vld [vmem:[%s735_s10] sm:$0x1]  ;;  %1479 = vmatpush3.msra.mxu0 %v874_v15  ;;  %v1213_v15 = vld [vmem:[#allocation5] sm:$0xff] }
 0x19c   : > { %v731_v17 = vld [vmem:[%s730_s12] sm:$0x7]  ;;  %737 = vst [vmem:[#allocation7 + $0x4] sm:$0x1] %v736_v16  ;;  %v1214_v16 = vld [vmem:[#allocation5 + $0x8] sm:$0xff]  ;;  %s2220_s10 = sld [smem:[#allocation9 + %s2046_s11]] }
 0x19d   : > { %v761_v18 = vld [vmem:[%s760_s30] sm:$0x1]  ;;  %733 = vst.msk [vmem:[#allocation6 + $0x4] ss:$8 sm:$0x7] %vm2158_vm2, %v731_v17  ;;  %s2223_s25 = sld [smem:[#allocation9 + %s2052_s13]] }
 0x19e   : > { %v949_v19 = vld [vmem:[#allocation18 + $0x430] sm:$0xff]  ;;  %762 = vst [vmem:[#allocation7 + $0x5] sm:$0x1] %v761_v18  ;;  %s2229_s27 = sld [smem:[#allocation9 + %s2061_s16]]  ;;  %s1251_s11 = scalar_lea.vmem [#allocation2], %s2211_s24 }
 0x19f   : > { %v756_v20 = vld [vmem:[%s755_s15] sm:$0x7]  ;;  %1480 = vmatprep.subr.mxu0 %v949_v19  ;;  %s1246_s29 = scalar_lea.vmem [#allocation2], %s2208_s1  ;;  %s1276_s30 = scalar_lea.vmem [#allocation2], %s2226_s26 }
 0x1a0   : > { %v869_v21 = vld [vmem:[#allocation18 + $0x1b0] sm:$0xff]  ;;  %758 = vst.msk [vmem:[#allocation6 + $0x5] ss:$8 sm:$0x7] %vm2158_vm2, %v756_v20  ;;  %s1256_s13 = scalar_lea.vmem [#allocation2], %s2214_s20  ;;  %s1244_s15 = scalar_lea.vmem [#allocation20], %s2208_s1 }
 0x1a1   : > { %v786_v23 = vld [vmem:[%s785_s23] sm:$0x1]  ;;  %1481 = vmatpush3.msra.mxu0 %v869_v21  ;;  %s1824_s23 = smov [#allocation20]   ;;  %s1254_s5 = scalar_lea.vmem [#allocation20], %s2214_s20 }
 0x1a2   : > { %v781_v25 = vld [vmem:[%s780_s17] sm:$0x7]  ;;  %787 = vst [vmem:[#allocation7 + $0x6] sm:$0x1] %v786_v23  ;;  %1482 = vmatprep.subr.mxu0 %v944_v24  ;;  %s1266_s16 = scalar_lea.vmem [#allocation2], %s2220_s10  ;;  %s1289_s17 = sshll.u32 %s1824_s23, 4  ;;  %s1290_s17 = int_to_ptr.vmem [resolvable:$true] %s1289_s17 }
 0x1a3   : > { %783 = vst.msk [vmem:[#allocation6 + $0x6] ss:$8 sm:$0x7] %vm2158_vm2, %v781_v25  ;;  %1483 = vmatpush3.msra.mxu0 %v864_v26  ;;  %v811_v22 = vld [vmem:[%s810_s0] sm:$0x1]  ;;  %s1271_s12 = scalar_lea.vmem [#allocation2], %s2223_s25  ;;  %p1765_p5 = scmp.lt.s32.totalorder %s1290_s17, %s1290_s17 }
 0x1a4   : > { %1484 = vmatprep.subr.mxu0 %v939_v27  ;;  %v929_v31 = vld [vmem:[#allocation18 + $0x390] sm:$0xff]  ;;  %812 = vst [vmem:[#allocation7 + $0x7] sm:$0x1] %v811_v22  ;;  %s1281_s19 = scalar_lea.vmem [#allocation2], %s2229_s27  ;;  %s1259_s0 = scalar_lea.vmem [#allocation20], %s2217_s21 }
 0x1a5   : > { %1485 = vmatpush3.msra.mxu0 %v859_v28  ;;  %v849_v32 = vld [vmem:[#allocation18 + $0x110] sm:$0xff]  ;;  %s1269_s28 = scalar_lea.vmem [#allocation20], %s2223_s25  ;;  %s1279_s1 = scalar_lea.vmem [#allocation20], %s2229_s27 }
 0x1a6   : > { %1486 = vmatprep.subr.mxu0 %v934_v29  ;;  %v806_v33 = vld [vmem:[%s805_s22] sm:$0x7]  ;;  %s1264_s22 = scalar_lea.vmem [#allocation20], %s2220_s10  ;;  %s1758_s24 = scalar_lea.vmem %s1290_s17, 128 }
 0x1a7   : > { %1487 = vmatpush3.msra.mxu0 %v854_v30  ;;  %808 = vst.msk [vmem:[#allocation6 + $0x7] ss:$8 sm:$0x7] %vm2158_vm2, %v806_v33  ;;  %v909_v40 = vld [vmem:[#allocation18 + $0x2f0] sm:$0xff]  ;;  %p1759_p6 = scmp.ne.s32.totalorder %s1290_s17, %s1758_s24  ;;  %p1766_p8 = scmp.lt.s32.totalorder %s1758_s24, %s1758_s24 }
 0x1a8   : > { %1488 = vmatprep.subr.mxu0 %v929_v31  ;;  %v829_v41 = vld [vmem:[#allocation18 + $0x70] sm:$0xff] }
 0x1a9   : > { %1489 = vmatpush3.msra.mxu0 %v849_v32  ;;  %v1187_v48 = vld [vmem:[%s2268_s8] sm:$0x3]  ;;  %p1760_p7 = pnand %p1759_p6, %p1581_p3  ;;  %p1767_p9 = por %p1766_p8, %p1765_p5 }
 0x1aa   : > { %1490 = vmatprep.subr.mxu0 %v924_v34  ;;  %v1192_v51 = vrot.slane %v1187_v48, %v1191_v47  ;;  %v1196_v52 = vrot.slane %v1187_v48, %v1195_v49 }
 0x1ab   : > { %1491 = vmatpush3.msra.mxu0 %v844_v35  ;;  %v1238_v23 = vld [vmem:[#allocation7] sm:$0xff]  ;;  %p1761_p1 = pneg %p1760_p7 }
 0x1ac   : > { %1492 = vmatprep.subr.mxu0 %v919_v36 }
 0x1ad   : > { %1493 = vmatpush3.msra.mxu0 %v839_v37  ;;  %p1768_p11 = pnand %p1767_p9, %p1761_p1 }
 0x1ae   : > { %1494 = vmatprep.subr.mxu0 %v914_v38  ;;  %v1218_v57 = vld [vmem:[#allocation6] sm:$0xff]  ;;  %v1219_v0 = vld [vmem:[#allocation6 + $0x8] sm:$0xff]  ;;  %v1220_v10 = vld [vmem:[#allocation6 + $0x10] sm:$0xff] }
 0x1af   : > { %1495 = vmatpush3.msra.mxu0 %v834_v39 }
 0x1b0   : > { %1496 = vmatprep.subr.mxu0 %v909_v40 }
 0x1b1   : > { %1497 = vmatpush3.msra.mxu0 %v829_v41 }
 0x1b2   : > { %1498 = vmatprep.subr.mxu0 %v904_v42 }
 0x1b3   : > { %1499 = vmatpush3.msra.mxu0 %v824_v43 }
 0x1b4   : > { %1500 = vmatprep.subr.mxu0 %v899_v44 }
 0x1b5   : > { %1501 = vmatpush3.msra.mxu0 %v819_v45 }
 0x1b6   : > { %1182 = vmatmul.mubr.f32.vlgmr.msra.gmra.mxu0 %v2154_v56 }
 0x252   : > { %v1041_v50 = vpop.f32.mrf.mxu0 }
 0x253   : > { %v1199_v54 = vadd.f32 %v1192_v51, %v1041_v50 }
 0x254   : > { %v1043_v53 = vpop.f32.mrf.mxu0 }
 0x255   : > { %v1200_v58 = vadd.f32 %v1196_v52, %v1043_v53  ;;  %v1445_v61 = vmul.f32 -1.442695, %v1199_v54 }
 0x257   : > { %v1446_v62 = vmul.f32 -1.442695, %v1200_v58  ;;  %1610 = vpow2.f32 %v1445_v61 }
 0x259   : > { %1612 = vpow2.f32 %v1446_v62 }
 0x25a   : > { %v1112_v59 = vpop.f32.mrf.mxu1 }
 0x25b   : > { %v1221_v60 = vadd.f32 %v1218_v57, %v1112_v59 }
 0x25c   : > { %v1114_v63 = vpop.f32.mrf.mxu1 }
 0x25d   : > { %v1447_v56 = vmul.f32 -1.442695, %v1221_v60  ;;  %v1222_v4 = vadd.f32 %v1219_v0, %v1114_v63 }
 0x25f   : > { %1614 = vpow2.f32 %v1447_v56  ;;  %v1448_v8 = vmul.f32 -1.442695, %v1222_v4 }
 0x264   : > { %v1611_v55 = vpop.eup %1610 }
 0x265   : > { %v1207_v3 = vadd.f32 1.0, %v1611_v55 }
 0x266   : > { %v1613_v1 = vpop.eup %1612 }
 0x267   : > { %v1208_v5 = vadd.f32 1.0, %v1613_v1  ;;  %1616 = vrcp.f32 %v1207_v3 }
 0x269   : > { %1618 = vrcp.f32 %v1208_v5 }
 0x26c   : > { %v1615_v2 = vpop.eup %1614 }
 0x26d   : > { %v1227_v7 = vadd.f32 1.0, %v1615_v2 }
 0x26f   : > { %1620 = vrcp.f32 %v1227_v7 }
 0x270   : > { %1622 = vpow2.f32 %v1448_v8 }
 0x274   : > { %v1617_v13 = vpop.eup %1616 }
 0x275   : > { %v1215_v19 = vmul.f32 %v1617_v13, %v1213_v15 }
 0x276   : > { %v1502_v6 = vpop.f32.mrf.mxu0  ;;  %v1619_v14 = vpop.eup %1618 }
 0x277   : > { %v1216_v20 = vmul.f32 %v1619_v14, %v1214_v16 }
 0x278   : > { %v1503_v9 = vpop.f32.mrf.mxu0 }
 0x279   : > { %v1504_v11 = vadd.f32 %v1503_v9, %v1502_v6  ;;  %v1217_v26 = vadd.f32 %v1216_v20, %v1215_v19 }
 0x27b   : > { %v1223_v12 = vadd.f32 %v1504_v11, %v1220_v10 }
 0x27c   : > { %v1621_v17 = vpop.eup %1620 }
 0x27d   : > { %1624 = vtanh.f32 %v1223_v12  ;;  %v1623_v18 = vpop.eup %1622 }
 0x27e   : > { %v1233_v25 = vadd.f32 1.0, %v1623_v18 }
 0x280   : > { %1626 = vrcp.f32 %v1233_v25 }
 0x28a   : > { %v1625_v21 = vpop.eup %1624 }
 0x28b   : > { %v1237_v24 = vmul.f32 %v1625_v21, %v1621_v17 }
 0x28d   : > { %v1239_v27 = vadd.f32 %v1238_v23, %v1237_v24  ;;  %v1627_v29 = vpop.eup %1626 }
 0x28f   : > { %v1240_v28 = vadd.f32 %v1239_v27, %v1217_v26 }
 0x291   : > { %1628 = vtanh.f32 %v1240_v28  ;;  %1247 = vst [vmem:[%s1246_s29] sm:$0x1] %v1240_v28 }
 0x292   : > { %1252 = vst [vmem:[%s1251_s11 - $0x1] sm:$0x2] %v1240_v28 }
 0x293   : > { %1257 = vst [vmem:[%s1256_s13 - $0x2] sm:$0x4] %v1240_v28 }
 0x294   : > { %1262 = vst [vmem:[%s1261_s14 - $0x3] sm:$0x8] %v1240_v28 }
 0x295   : > { %1267 = vst [vmem:[%s1266_s16 - $0x4] sm:$0x10] %v1240_v28 }
 0x296   : > { %1272 = vst [vmem:[%s1271_s12 - $0x5] sm:$0x20] %v1240_v28 }
 0x297   : > { %1277 = vst [vmem:[%s1276_s30 - $0x6] sm:$0x40] %v1240_v28 }
 0x298   : > { %1282 = vst [vmem:[%s1281_s19 - $0x7] sm:$0x80] %v1240_v28 }
 0x29e   : > { %v1629_v30 = vpop.eup %1628 }
 0x29f   : > { %v1242_v22 = vmul.f32 %v1629_v30, %v1627_v29 }
 0x2a1   : > { %1245 = vst [vmem:[%s1244_s15] sm:$0x1] %v1242_v22 }
 0x2a2   : > { %1250 = vst [vmem:[%s1249_s3 - $0x1] sm:$0x2] %v1242_v22 }
 0x2a3   : > { %1255 = vst [vmem:[%s1254_s5 - $0x2] sm:$0x4] %v1242_v22 }
 0x2a4   : > { %1260 = vst [vmem:[%s1259_s0 - $0x3] sm:$0x8] %v1242_v22 }
 0x2a5   : > { %1265 = vst [vmem:[%s1264_s22 - $0x4] sm:$0x10] %v1242_v22 }
 0x2a6   : > { %1270 = vst [vmem:[%s1269_s28 - $0x5] sm:$0x20] %v1242_v22 }
 0x2a7   : > { %1275 = vst [vmem:[%s1274_s4 - $0x6] sm:$0x40] %v1242_v22 }
 0x2a8   : > { %1280 = vst [vmem:[%s1279_s1 - $0x7] sm:$0x80] %v1242_v22 }
 0x2a9   : > { %1771 = shalt.err (!%p1768_p11)
}
 0x2aa   : > { %s1825_s20 = smov 16   ;;  %s1826_s21 = smov 1  }
 0x2ab   : > { %1557 = dma.vmem_to_hbm [thread:$0]  (%p1581_p3), %s1290_s17, 128, %s2269_s9, [#allocation14], %s1825_s20, %s1825_s20, %s1826_s21  }
 0x2ac   : > { %1801 = dma.done.wait (%p1581_p3), [#allocation14], 128  }
 0x2ad   : > { %1803 = vsyncadd (%p1581_p3), [#allocation14], 4294967168 }
 0x2ae PF: > { %s31_s18 = sadd.s32 1, %s1806_s18  }
 0x2af   : > { %p28_p10 = scmp.ge.s32.totalorder %s31_s18, 5  }
 0x2b1   :  { %30 = sbr.rel (!%p28_p10) target bundleno = 14 (0xe), region = 167 }
 0x2b6   :  { %1305 = vsyncpa [#allocation13], 1 }
 0x2b7   :  { %1307 = vsyncpa [#allocation13 + $0x1], 1 }
 0x2b8   :  { %1308 = vsyncpa [#allocation16], 1 }
 0x2b9   :  { %1309 = vsyncpa [#allocation19], 1 }
 0x2ba   :  { %1310 = vsyncpa [#allocation14], 1 }
 0x2bb   :  { %1312 = vsyncpa [#allocation14 + $0x1], 1 }

</bundles_post_ra>
